<compile_context>
chip_gen: v6e
topology: v6e:2x2x1
jax: 0.10.0
libtpu: 0.0.40
codegen_flags: <defaults>
</compile_context>

<pallas_src>
import jax
import jax.numpy as jnp
from jax.experimental import pallas as pl
from jax.experimental.pallas import tpu as pltpu


# ---------------------------------------------------------------------------
# Pallas kernel: fused (im2col-GEMM) Conv3x3 + folded-BN + ReLU
# ---------------------------------------------------------------------------
def _conv_gemm_bn_relu_kernel(patches_ref, w_ref, scale_ref, shift_ref, out_ref):
    # patches: (TM, K) bf16, w: (K, Epad) bf16, scale/shift: (1, Epad) f32
    acc = jnp.dot(patches_ref[...], w_ref[...],
                  preferred_element_type=jnp.float32)          # MXU, f32 accum
    y = acc * scale_ref[...] + shift_ref[...]                  # folded BN + bias
    out_ref[...] = jnp.maximum(y, 0.0).astype(out_ref.dtype)   # ReLU


def _round_up(n, m):
    return ((n + m - 1) // m) * m


def conv3x3_bn_relu(x_nhwc, weight, bias, gamma, beta, mean, var,
                    eps=1e-5, tm_max=256):
    """x_nhwc: (B, H, W, C).  weight: (E, C, 3, 3) PyTorch OIHW.  Returns
    (B, H, W, E) f32, equal to relu(batchnorm(conv2d(x, weight, bias)))."""
    B, H, W, C = x_nhwc.shape
    E = weight.shape[0]
    K = C * 9

    # --- im2col in the wrapper (kept in (c, kh, kw) flatten order to match
    #     PyTorch's Conv2d weight.reshape(E, C*9)) ---
    xp = jnp.pad(x_nhwc, ((0, 0), (1, 1), (1, 1), (0, 0)))
    cols = [xp[:, kh:kh + H, kw:kw + W, :]        # each (B, H, W, C)
            for kh in range(3) for kw in range(3)]
    patches = jnp.stack(cols, axis=4)             # (B, H, W, C, 9)
    patches = patches.reshape(B * H * W, K)       # row-index = c*9 + (kh*3+kw)

    w2d = weight.reshape(E, K).T                  # (K, E), same flatten order

    # --- fold BatchNorm (running stats) + conv bias into scale/shift ---
    scale = gamma / jnp.sqrt(var + eps)           # (E,)
    shift = beta + scale * (bias - mean)          # (E,)

    # --- pad lanes (E -> multiple of 128) and rows (M -> multiple of TM) ---
    M = B * H * W
    Epad = _round_up(E, 128)
    TM = min(tm_max, _round_up(M, 8))
    Mpad = _round_up(M, TM)

    patches = patches.astype(jnp.bfloat16)
    w2d = w2d.astype(jnp.bfloat16)
    if Mpad != M:
        patches = jnp.pad(patches, ((0, Mpad - M), (0, 0)))
    if Epad != E:
        w2d = jnp.pad(w2d, ((0, 0), (0, Epad - E)))
        scale = jnp.pad(scale, (0, Epad - E))
        shift = jnp.pad(shift, (0, Epad - E))
    scale2 = scale.reshape(1, Epad).astype(jnp.float32)
    shift2 = shift.reshape(1, Epad).astype(jnp.float32)

    out = pl.pallas_call(
        _conv_gemm_bn_relu_kernel,
        out_shape=jax.ShapeDtypeStruct((Mpad, Epad), jnp.float32),
        grid=(Mpad // TM,),
        in_specs=[
            pl.BlockSpec((TM, K), lambda i: (i, 0)),       # patch rows: tiled
            pl.BlockSpec((K, Epad), lambda i: (0, 0)),     # weight: resident
            pl.BlockSpec((1, Epad), lambda i: (0, 0)),     # scale: resident
            pl.BlockSpec((1, Epad), lambda i: (0, 0)),     # shift: resident
        ],
        out_specs=pl.BlockSpec((TM, Epad), lambda i: (i, 0)),
        compiler_params=pltpu.CompilerParams(
            dimension_semantics=("parallel",),             # v7x: 2 TCs
            vmem_limit_bytes=48 * 1024 * 1024,             # fits v7x 64 MiB
        ),
    )(patches, w2d, scale2, shift2)

    return out[:M, :E].reshape(B, H, W, E)


# ---------------------------------------------------------------------------
# MaxPool2d(2)  (memory-bound; left to XLA)
# ---------------------------------------------------------------------------
def maxpool2x2(x_nhwc):
    B, H, W, C = x_nhwc.shape
    return jnp.max(x_nhwc.reshape(B, H // 2, 2, W // 2, 2, C), axis=(2, 4))


# ---------------------------------------------------------------------------
# Full encoder forward (NCHW in, NCHW out — matches the PyTorch module)
# ---------------------------------------------------------------------------
def encoder_forward(x_nchw, shape_img, params):
    B, _, H, W = x_nchw.shape
    shapeinfo = jnp.broadcast_to(shape_img.reshape(1, 1, H, W), (B, 1, H, W))
    x = jnp.concatenate([x_nchw, shapeinfo], axis=1)     # concat extra channel
    x = x.transpose(0, 2, 3, 1)                          # -> NHWC (lane = C)
    for idx, p in enumerate(params):                     # 10 conv layers
        x = conv3x3_bn_relu(x, **p)
        if idx in (1, 3, 5, 7):                          # pool between blocks
            x = maxpool2x2(x)
    return x.transpose(0, 3, 1, 2)                       # back to NCHW


# ---------------------------------------------------------------------------
# Pure-JAX reference (same bf16 operand quantization, f32 accumulation)
# ---------------------------------------------------------------------------
def _ref_conv_bn_relu(x_nchw, weight, bias, gamma, beta, mean, var, eps=1e-5):
    y = jax.lax.conv_general_dilated(
        x_nchw.astype(jnp.bfloat16), weight.astype(jnp.bfloat16),
        window_strides=(1, 1), padding=((1, 1), (1, 1)),
        dimension_numbers=("NCHW", "OIHW", "NCHW"),
        preferred_element_type=jnp.float32)
    scale = gamma / jnp.sqrt(var + eps)
    shift = beta + scale * (bias - mean)
    y = y * scale.reshape(1, -1, 1, 1) + shift.reshape(1, -1, 1, 1)
    return jnp.maximum(y, 0.0)


def _ref_maxpool(x_nchw):
    B, C, H, W = x_nchw.shape
    return jnp.max(x_nchw.reshape(B, C, H // 2, 2, W // 2, 2), axis=(3, 5))


def encoder_reference(x_nchw, shape_img, params):
    B, _, H, W = x_nchw.shape
    shapeinfo = jnp.broadcast_to(shape_img.reshape(1, 1, H, W), (B, 1, H, W))
    x = jnp.concatenate([x_nchw, shapeinfo], axis=1)
    for idx, p in enumerate(params):
        x = _ref_conv_bn_relu(x, **p)
        if idx in (1, 3, 5, 7):
            x = _ref_maxpool(x)
    return x


# ---------------------------------------------------------------------------
# Deterministic parameter init (inference-mode BN stats)
# ---------------------------------------------------------------------------
def init_params(key, in_channels, bw):
    layer_channels = [
        (in_channels, bw), (bw, bw),                 # block1
        (bw, 2 * bw), (2 * bw, 2 * bw),              # block2
        (2 * bw, 4 * bw), (4 * bw, 4 * bw),          # block3
        (4 * bw, 8 * bw), (8 * bw, 8 * bw),          # block4
        (8 * bw, 8 * bw), (8 * bw, 8 * bw),          # block5
    ]
    params = []
    for ci, co in layer_channels:
        key, k1, k2, k3, k4, k5, k6 = jax.random.split(key, 7)
        params.append(dict(
            weight=jax.random.normal(k1, (co, ci, 3, 3), jnp.float32)
                   * (2.0 / (ci * 9)) ** 0.5,
            bias=0.05 * jax.random.normal(k2, (co,), jnp.float32),
            gamma=1.0 + 0.1 * jax.random.normal(k3, (co,), jnp.float32),
            beta=0.1 * jax.random.normal(k4, (co,), jnp.float32),
            mean=0.1 * jax.random.normal(k5, (co,), jnp.float32),
            var=1.0 + 0.2 * jax.random.uniform(k6, (co,), jnp.float32),
        ))
    return params


if __name__ == "__main__":
    # Small shapes consistent with the module: image 16x16, 3 input channels
    # (+1 synthetic shape-info channel -> in_channels=4), base_width=8.
    B, Cin, H, W = 2, 3, 16, 16
    base_width = 8

    key = jax.random.PRNGKey(0)
    key, kx, ks = jax.random.split(key, 3)
    x = jax.random.normal(kx, (B, Cin, H, W), dtype=jnp.float32)
    # Deterministic stand-in for the cv2-loaded grayscale shape map in [0, 1].
    shape_img = jax.random.uniform(ks, (H, W), dtype=jnp.float32)
    params = init_params(key, Cin + 1, base_width)

    fwd = jax.jit(encoder_forward)
    out = jax.block_until_ready(fwd(x, shape_img, params))

    ref = encoder_reference(x, shape_img, params)

    assert out.shape == (B, 8 * base_width, H // 16, W // 16), out.shape
    max_err = float(jnp.max(jnp.abs(out - ref)))
    assert jnp.allclose(out, ref, atol=1e-2, rtol=1e-2), max_err
    print("KERNEL_OK")
</pallas_src>

<mosaic_0001>
module attributes {stable_mosaic.version = 11 : i64} {
  func.func @_conv_gemm_bn_relu_kernel(%arg0: i32, %arg1: memref<256x36xbf16, #tpu.memory_space<vmem>>, %arg2: memref<36x128xbf16, #tpu.memory_space<vmem>>, %arg3: memref<1x128xf32, #tpu.memory_space<vmem>>, %arg4: memref<1x128xf32, #tpu.memory_space<vmem>>, %arg5: memref<256x128xf32, #tpu.memory_space<vmem>>) attributes {dimension_semantics = [#tpu.dimension_semantics<parallel>], iteration_bounds = array<i64: 2>, scalar_prefetch = 0 : i64, scratch_operands = 0 : i64, tpu.core_type = #tpu.core_type<tc>, window_params = [{transform_indices = @transform_0, window_bounds = array<i64: 256, 36>}, {pipeline_mode = #tpu.pipeline_mode<synchronous>, transform_indices = @transform_1, window_bounds = array<i64: 36, 128>}, {pipeline_mode = #tpu.pipeline_mode<synchronous>, transform_indices = @transform_2, window_bounds = array<i64: 1, 128>}, {pipeline_mode = #tpu.pipeline_mode<synchronous>, transform_indices = @transform_3, window_bounds = array<i64: 1, 128>}, {transform_indices = @transform_4, window_bounds = array<i64: 256, 128>}]} {
    %c0 = arith.constant 0 : index
    %c0_0 = arith.constant 0 : index
    %0 = vector.load %arg1[%c0, %c0_0] : memref<256x36xbf16, #tpu.memory_space<vmem>>, vector<256x36xbf16>
    %c0_1 = arith.constant 0 : index
    %c0_2 = arith.constant 0 : index
    %1 = vector.load %arg2[%c0_1, %c0_2] : memref<36x128xbf16, #tpu.memory_space<vmem>>, vector<36x128xbf16>
    %cst = arith.constant dense<0.000000e+00> : vector<256x128xf32>
    %2 = tpu.matmul %0, %1, %cst {dimension_numbers = #tpu.dot_dimension_numbers<[1], [0], [0], [1], [0, 0, 1, 1], [], []>} : vector<256x36xbf16>, vector<36x128xbf16>, vector<256x128xf32> -> vector<256x128xf32>
    %c0_3 = arith.constant 0 : index
    %c0_4 = arith.constant 0 : index
    %3 = vector.load %arg3[%c0_3, %c0_4] : memref<1x128xf32, #tpu.memory_space<vmem>>, vector<1x128xf32>
    %4 = vector.broadcast %3 : vector<1x128xf32> to vector<256x128xf32>
    %5 = arith.mulf %2, %4 : vector<256x128xf32>
    %c0_5 = arith.constant 0 : index
    %c0_6 = arith.constant 0 : index
    %6 = vector.load %arg4[%c0_5, %c0_6] : memref<1x128xf32, #tpu.memory_space<vmem>>, vector<1x128xf32>
    %7 = vector.broadcast %6 : vector<1x128xf32> to vector<256x128xf32>
    %8 = arith.addf %5, %7 : vector<256x128xf32>
    %cst_7 = arith.constant 0.000000e+00 : f32
    %9 = vector.broadcast %cst_7 : f32 to vector<256x128xf32>
    %10 = arith.maximumf %8, %9 : vector<256x128xf32>
    %c0_8 = arith.constant 0 : index
    %c0_9 = arith.constant 0 : index
    %11 = vector.load %arg5[%c0_8, %c0_9] : memref<256x128xf32, #tpu.memory_space<vmem>>, vector<256x128xf32>
    tpu.vector_store %arg5[%c0_8, %c0_9], %10 {strides = array<i32>} : memref<256x128xf32, #tpu.memory_space<vmem>>, vector<256x128xf32>,
    return
  }
  func.func @transform_0(%arg0: i32) -> (i32, i32) {
    %c0_i32 = arith.constant 0 : i32
    %c0_i32_0 = arith.constant 0 : i32
    return %arg0, %c0_i32 : i32, i32
  }
  func.func @transform_1(%arg0: i32) -> (i32, i32) {
    %c0_i32 = arith.constant 0 : i32
    %c0_i32_0 = arith.constant 0 : i32
    %c0_i32_1 = arith.constant 0 : i32
    return %c0_i32, %c0_i32_0 : i32, i32
  }
  func.func @transform_2(%arg0: i32) -> (i32, i32) {
    %c0_i32 = arith.constant 0 : i32
    %c0_i32_0 = arith.constant 0 : i32
    %c0_i32_1 = arith.constant 0 : i32
    return %c0_i32, %c0_i32_0 : i32, i32
  }
  func.func @transform_3(%arg0: i32) -> (i32, i32) {
    %c0_i32 = arith.constant 0 : i32
    %c0_i32_0 = arith.constant 0 : i32
    %c0_i32_1 = arith.constant 0 : i32
    return %c0_i32, %c0_i32_0 : i32, i32
  }
  func.func @transform_4(%arg0: i32) -> (i32, i32) {
    %c0_i32 = arith.constant 0 : i32
    %c0_i32_0 = arith.constant 0 : i32
    return %arg0, %c0_i32 : i32, i32
  }
}

module attributes {stable_mosaic.version = 11 : i64} {
  func.func @_conv_gemm_bn_relu_kernel(%arg0: i32, %arg1: memref<256x72xbf16, #tpu.memory_space<vmem>>, %arg2: memref<72x128xbf16, #tpu.memory_space<vmem>>, %arg3: memref<1x128xf32, #tpu.memory_space<vmem>>, %arg4: memref<1x128xf32, #tpu.memory_space<vmem>>, %arg5: memref<256x128xf32, #tpu.memory_space<vmem>>) attributes {dimension_semantics = [#tpu.dimension_semantics<parallel>], iteration_bounds = array<i64: 2>, scalar_prefetch = 0 : i64, scratch_operands = 0 : i64, tpu.core_type = #tpu.core_type<tc>, window_params = [{transform_indices = @transform_0, window_bounds = array<i64: 256, 72>}, {pipeline_mode = #tpu.pipeline_mode<synchronous>, transform_indices = @transform_1, window_bounds = array<i64: 72, 128>}, {pipeline_mode = #tpu.pipeline_mode<synchronous>, transform_indices = @transform_2, window_bounds = array<i64: 1, 128>}, {pipeline_mode = #tpu.pipeline_mode<synchronous>, transform_indices = @transform_3, window_bounds = array<i64: 1, 128>}, {transform_indices = @transform_4, window_bounds = array<i64: 256, 128>}]} {
    %c0 = arith.constant 0 : index
    %c0_0 = arith.constant 0 : index
    %0 = vector.load %arg1[%c0, %c0_0] : memref<256x72xbf16, #tpu.memory_space<vmem>>, vector<256x72xbf16>
    %c0_1 = arith.constant 0 : index
    %c0_2 = arith.constant 0 : index
    %1 = vector.load %arg2[%c0_1, %c0_2] : memref<72x128xbf16, #tpu.memory_space<vmem>>, vector<72x128xbf16>
    %cst = arith.constant dense<0.000000e+00> : vector<256x128xf32>
    %2 = tpu.matmul %0, %1, %cst {dimension_numbers = #tpu.dot_dimension_numbers<[1], [0], [0], [1], [0, 0, 1, 1], [], []>} : vector<256x72xbf16>, vector<72x128xbf16>, vector<256x128xf32> -> vector<256x128xf32>
    %c0_3 = arith.constant 0 : index
    %c0_4 = arith.constant 0 : index
    %3 = vector.load %arg3[%c0_3, %c0_4] : memref<1x128xf32, #tpu.memory_space<vmem>>, vector<1x128xf32>
    %4 = vector.broadcast %3 : vector<1x128xf32> to vector<256x128xf32>
    %5 = arith.mulf %2, %4 : vector<256x128xf32>
    %c0_5 = arith.constant 0 : index
    %c0_6 = arith.constant 0 : index
    %6 = vector.load %arg4[%c0_5, %c0_6] : memref<1x128xf32, #tpu.memory_space<vmem>>, vector<1x128xf32>
    %7 = vector.broadcast %6 : vector<1x128xf32> to vector<256x128xf32>
    %8 = arith.addf %5, %7 : vector<256x128xf32>
    %cst_7 = arith.constant 0.000000e+00 : f32
    %9 = vector.broadcast %cst_7 : f32 to vector<256x128xf32>
    %10 = arith.maximumf %8, %9 : vector<256x128xf32>
    %c0_8 = arith.constant 0 : index
    %c0_9 = arith.constant 0 : index
    %11 = vector.load %arg5[%c0_8, %c0_9] : memref<256x128xf32, #tpu.memory_space<vmem>>, vector<256x128xf32>
    tpu.vector_store %arg5[%c0_8, %c0_9], %10 {strides = array<i32>} : memref<256x128xf32, #tpu.memory_space<vmem>>, vector<256x128xf32>,
    return
  }
  func.func @transform_0(%arg0: i32) -> (i32, i32) {
    %c0_i32 = arith.constant 0 : i32
    %c0_i32_0 = arith.constant 0 : i32
    return %arg0, %c0_i32 : i32, i32
  }
  func.func @transform_1(%arg0: i32) -> (i32, i32) {
    %c0_i32 = arith.constant 0 : i32
    %c0_i32_0 = arith.constant 0 : i32
    %c0_i32_1 = arith.constant 0 : i32
    return %c0_i32, %c0_i32_0 : i32, i32
  }
  func.func @transform_2(%arg0: i32) -> (i32, i32) {
    %c0_i32 = arith.constant 0 : i32
    %c0_i32_0 = arith.constant 0 : i32
    %c0_i32_1 = arith.constant 0 : i32
    return %c0_i32, %c0_i32_0 : i32, i32
  }
  func.func @transform_3(%arg0: i32) -> (i32, i32) {
    %c0_i32 = arith.constant 0 : i32
    %c0_i32_0 = arith.constant 0 : i32
    %c0_i32_1 = arith.constant 0 : i32
    return %c0_i32, %c0_i32_0 : i32, i32
  }
  func.func @transform_4(%arg0: i32) -> (i32, i32) {
    %c0_i32 = arith.constant 0 : i32
    %c0_i32_0 = arith.constant 0 : i32
    return %arg0, %c0_i32 : i32, i32
  }
}

module attributes {stable_mosaic.version = 11 : i64} {
  func.func @_conv_gemm_bn_relu_kernel(%arg0: i32, %arg1: memref<128x72xbf16, #tpu.memory_space<vmem>>, %arg2: memref<72x128xbf16, #tpu.memory_space<vmem>>, %arg3: memref<1x128xf32, #tpu.memory_space<vmem>>, %arg4: memref<1x128xf32, #tpu.memory_space<vmem>>, %arg5: memref<128x128xf32, #tpu.memory_space<vmem>>) attributes {dimension_semantics = [#tpu.dimension_semantics<parallel>], iteration_bounds = array<i64: 1>, scalar_prefetch = 0 : i64, scratch_operands = 0 : i64, tpu.core_type = #tpu.core_type<tc>, window_params = [{transform_indices = @transform_0, window_bounds = array<i64: 128, 72>}, {pipeline_mode = #tpu.pipeline_mode<synchronous>, transform_indices = @transform_1, window_bounds = array<i64: 72, 128>}, {pipeline_mode = #tpu.pipeline_mode<synchronous>, transform_indices = @transform_2, window_bounds = array<i64: 1, 128>}, {pipeline_mode = #tpu.pipeline_mode<synchronous>, transform_indices = @transform_3, window_bounds = array<i64: 1, 128>}, {transform_indices = @transform_4, window_bounds = array<i64: 128, 128>}]} {
    %c0 = arith.constant 0 : index
    %c0_0 = arith.constant 0 : index
    %0 = vector.load %arg1[%c0, %c0_0] : memref<128x72xbf16, #tpu.memory_space<vmem>>, vector<128x72xbf16>
    %c0_1 = arith.constant 0 : index
    %c0_2 = arith.constant 0 : index
    %1 = vector.load %arg2[%c0_1, %c0_2] : memref<72x128xbf16, #tpu.memory_space<vmem>>, vector<72x128xbf16>
    %cst = arith.constant dense<0.000000e+00> : vector<128x128xf32>
    %2 = tpu.matmul %0, %1, %cst {dimension_numbers = #tpu.dot_dimension_numbers<[1], [0], [0], [1], [0, 0, 1, 1], [], []>} : vector<128x72xbf16>, vector<72x128xbf16>, vector<128x128xf32> -> vector<128x128xf32>
    %c0_3 = arith.constant 0 : index
    %c0_4 = arith.constant 0 : index
    %3 = vector.load %arg3[%c0_3, %c0_4] : memref<1x128xf32, #tpu.memory_space<vmem>>, vector<1x128xf32>
    %4 = vector.broadcast %3 : vector<1x128xf32> to vector<128x128xf32>
    %5 = arith.mulf %2, %4 : vector<128x128xf32>
    %c0_5 = arith.constant 0 : index
    %c0_6 = arith.constant 0 : index
    %6 = vector.load %arg4[%c0_5, %c0_6] : memref<1x128xf32, #tpu.memory_space<vmem>>, vector<1x128xf32>
    %7 = vector.broadcast %6 : vector<1x128xf32> to vector<128x128xf32>
    %8 = arith.addf %5, %7 : vector<128x128xf32>
    %cst_7 = arith.constant 0.000000e+00 : f32
    %9 = vector.broadcast %cst_7 : f32 to vector<128x128xf32>
    %10 = arith.maximumf %8, %9 : vector<128x128xf32>
    %c0_8 = arith.constant 0 : index
    %c0_9 = arith.constant 0 : index
    %11 = vector.load %arg5[%c0_8, %c0_9] : memref<128x128xf32, #tpu.memory_space<vmem>>, vector<128x128xf32>
    tpu.vector_store %arg5[%c0_8, %c0_9], %10 {strides = array<i32>} : memref<128x128xf32, #tpu.memory_space<vmem>>, vector<128x128xf32>,
    return
  }
  func.func @transform_0(%arg0: i32) -> (i32, i32) {
    %c0_i32 = arith.constant 0 : i32
    %c0_i32_0 = arith.constant 0 : i32
    return %arg0, %c0_i32 : i32, i32
  }
  func.func @transform_1(%arg0: i32) -> (i32, i32) {
    %c0_i32 = arith.constant 0 : i32
    %c0_i32_0 = arith.constant 0 : i32
    %c0_i32_1 = arith.constant 0 : i32
    return %c0_i32, %c0_i32_0 : i32, i32
  }
  func.func @transform_2(%arg0: i32) -> (i32, i32) {
    %c0_i32 = arith.constant 0 : i32
    %c0_i32_0 = arith.constant 0 : i32
    %c0_i32_1 = arith.constant 0 : i32
    return %c0_i32, %c0_i32_0 : i32, i32
  }
  func.func @transform_3(%arg0: i32) -> (i32, i32) {
    %c0_i32 = arith.constant 0 : i32
    %c0_i32_0 = arith.constant 0 : i32
    %c0_i32_1 = arith.constant 0 : i32
    return %c0_i32, %c0_i32_0 : i32, i32
  }
  func.func @transform_4(%arg0: i32) -> (i32, i32) {
    %c0_i32 = arith.constant 0 : i32
    %c0_i32_0 = arith.constant 0 : i32
    return %arg0, %c0_i32 : i32, i32
  }
}

module attributes {stable_mosaic.version = 11 : i64} {
  func.func @_conv_gemm_bn_relu_kernel(%arg0: i32, %arg1: memref<128x144xbf16, #tpu.memory_space<vmem>>, %arg2: memref<144x128xbf16, #tpu.memory_space<vmem>>, %arg3: memref<1x128xf32, #tpu.memory_space<vmem>>, %arg4: memref<1x128xf32, #tpu.memory_space<vmem>>, %arg5: memref<128x128xf32, #tpu.memory_space<vmem>>) attributes {dimension_semantics = [#tpu.dimension_semantics<parallel>], iteration_bounds = array<i64: 1>, scalar_prefetch = 0 : i64, scratch_operands = 0 : i64, tpu.core_type = #tpu.core_type<tc>, window_params = [{transform_indices = @transform_0, window_bounds = array<i64: 128, 144>}, {pipeline_mode = #tpu.pipeline_mode<synchronous>, transform_indices = @transform_1, window_bounds = array<i64: 144, 128>}, {pipeline_mode = #tpu.pipeline_mode<synchronous>, transform_indices = @transform_2, window_bounds = array<i64: 1, 128>}, {pipeline_mode = #tpu.pipeline_mode<synchronous>, transform_indices = @transform_3, window_bounds = array<i64: 1, 128>}, {transform_indices = @transform_4, window_bounds = array<i64: 128, 128>}]} {
    %c0 = arith.constant 0 : index
    %c0_0 = arith.constant 0 : index
    %0 = vector.load %arg1[%c0, %c0_0] : memref<128x144xbf16, #tpu.memory_space<vmem>>, vector<128x144xbf16>
    %c0_1 = arith.constant 0 : index
    %c0_2 = arith.constant 0 : index
    %1 = vector.load %arg2[%c0_1, %c0_2] : memref<144x128xbf16, #tpu.memory_space<vmem>>, vector<144x128xbf16>
    %cst = arith.constant dense<0.000000e+00> : vector<128x128xf32>
    %2 = tpu.matmul %0, %1, %cst {dimension_numbers = #tpu.dot_dimension_numbers<[1], [0], [0], [1], [0, 0, 1, 1], [], []>} : vector<128x144xbf16>, vector<144x128xbf16>, vector<128x128xf32> -> vector<128x128xf32>
    %c0_3 = arith.constant 0 : index
    %c0_4 = arith.constant 0 : index
    %3 = vector.load %arg3[%c0_3, %c0_4] : memref<1x128xf32, #tpu.memory_space<vmem>>, vector<1x128xf32>
    %4 = vector.broadcast %3 : vector<1x128xf32> to vector<128x128xf32>
    %5 = arith.mulf %2, %4 : vector<128x128xf32>
    %c0_5 = arith.constant 0 : index
    %c0_6 = arith.constant 0 : index
    %6 = vector.load %arg4[%c0_5, %c0_6] : memref<1x128xf32, #tpu.memory_space<vmem>>, vector<1x128xf32>
    %7 = vector.broadcast %6 : vector<1x128xf32> to vector<128x128xf32>
    %8 = arith.addf %5, %7 : vector<128x128xf32>
    %cst_7 = arith.constant 0.000000e+00 : f32
    %9 = vector.broadcast %cst_7 : f32 to vector<128x128xf32>
    %10 = arith.maximumf %8, %9 : vector<128x128xf32>
    %c0_8 = arith.constant 0 : index
    %c0_9 = arith.constant 0 : index
    %11 = vector.load %arg5[%c0_8, %c0_9] : memref<128x128xf32, #tpu.memory_space<vmem>>, vector<128x128xf32>
    tpu.vector_store %arg5[%c0_8, %c0_9], %10 {strides = array<i32>} : memref<128x128xf32, #tpu.memory_space<vmem>>, vector<128x128xf32>,
    return
  }
  func.func @transform_0(%arg0: i32) -> (i32, i32) {
    %c0_i32 = arith.constant 0 : i32
    %c0_i32_0 = arith.constant 0 : i32
    return %arg0, %c0_i32 : i32, i32
  }
  func.func @transform_1(%arg0: i32) -> (i32, i32) {
    %c0_i32 = arith.constant 0 : i32
    %c0_i32_0 = arith.constant 0 : i32
    %c0_i32_1 = arith.constant 0 : i32
    return %c0_i32, %c0_i32_0 : i32, i32
  }
  func.func @transform_2(%arg0: i32) -> (i32, i32) {
    %c0_i32 = arith.constant 0 : i32
    %c0_i32_0 = arith.constant 0 : i32
    %c0_i32_1 = arith.constant 0 : i32
    return %c0_i32, %c0_i32_0 : i32, i32
  }
  func.func @transform_3(%arg0: i32) -> (i32, i32) {
    %c0_i32 = arith.constant 0 : i32
    %c0_i32_0 = arith.constant 0 : i32
    %c0_i32_1 = arith.constant 0 : i32
    return %c0_i32, %c0_i32_0 : i32, i32
  }
  func.func @transform_4(%arg0: i32) -> (i32, i32) {
    %c0_i32 = arith.constant 0 : i32
    %c0_i32_0 = arith.constant 0 : i32
    return %arg0, %c0_i32 : i32, i32
  }
}

module attributes {stable_mosaic.version = 11 : i64} {
  func.func @_conv_gemm_bn_relu_kernel(%arg0: i32, %arg1: memref<32x144xbf16, #tpu.memory_space<vmem>>, %arg2: memref<144x128xbf16, #tpu.memory_space<vmem>>, %arg3: memref<1x128xf32, #tpu.memory_space<vmem>>, %arg4: memref<1x128xf32, #tpu.memory_space<vmem>>, %arg5: memref<32x128xf32, #tpu.memory_space<vmem>>) attributes {dimension_semantics = [#tpu.dimension_semantics<parallel>], iteration_bounds = array<i64: 1>, scalar_prefetch = 0 : i64, scratch_operands = 0 : i64, tpu.core_type = #tpu.core_type<tc>, window_params = [{transform_indices = @transform_0, window_bounds = array<i64: 32, 144>}, {pipeline_mode = #tpu.pipeline_mode<synchronous>, transform_indices = @transform_1, window_bounds = array<i64: 144, 128>}, {pipeline_mode = #tpu.pipeline_mode<synchronous>, transform_indices = @transform_2, window_bounds = array<i64: 1, 128>}, {pipeline_mode = #tpu.pipeline_mode<synchronous>, transform_indices = @transform_3, window_bounds = array<i64: 1, 128>}, {transform_indices = @transform_4, window_bounds = array<i64: 32, 128>}]} {
    %c0 = arith.constant 0 : index
    %c0_0 = arith.constant 0 : index
    %0 = vector.load %arg1[%c0, %c0_0] : memref<32x144xbf16, #tpu.memory_space<vmem>>, vector<32x144xbf16>
    %c0_1 = arith.constant 0 : index
    %c0_2 = arith.constant 0 : index
    %1 = vector.load %arg2[%c0_1, %c0_2] : memref<144x128xbf16, #tpu.memory_space<vmem>>, vector<144x128xbf16>
    %cst = arith.constant dense<0.000000e+00> : vector<32x128xf32>
    %2 = tpu.matmul %0, %1, %cst {dimension_numbers = #tpu.dot_dimension_numbers<[1], [0], [0], [1], [0, 0, 1, 1], [], []>} : vector<32x144xbf16>, vector<144x128xbf16>, vector<32x128xf32> -> vector<32x128xf32>
    %c0_3 = arith.constant 0 : index
    %c0_4 = arith.constant 0 : index
    %3 = vector.load %arg3[%c0_3, %c0_4] : memref<1x128xf32, #tpu.memory_space<vmem>>, vector<1x128xf32>
    %4 = vector.broadcast %3 : vector<1x128xf32> to vector<32x128xf32>
    %5 = arith.mulf %2, %4 : vector<32x128xf32>
    %c0_5 = arith.constant 0 : index
    %c0_6 = arith.constant 0 : index
    %6 = vector.load %arg4[%c0_5, %c0_6] : memref<1x128xf32, #tpu.memory_space<vmem>>, vector<1x128xf32>
    %7 = vector.broadcast %6 : vector<1x128xf32> to vector<32x128xf32>
    %8 = arith.addf %5, %7 : vector<32x128xf32>
    %cst_7 = arith.constant 0.000000e+00 : f32
    %9 = vector.broadcast %cst_7 : f32 to vector<32x128xf32>
    %10 = arith.maximumf %8, %9 : vector<32x128xf32>
    %c0_8 = arith.constant 0 : index
    %c0_9 = arith.constant 0 : index
    %11 = vector.load %arg5[%c0_8, %c0_9] : memref<32x128xf32, #tpu.memory_space<vmem>>, vector<32x128xf32>
    tpu.vector_store %arg5[%c0_8, %c0_9], %10 {strides = array<i32>} : memref<32x128xf32, #tpu.memory_space<vmem>>, vector<32x128xf32>,
    return
  }
  func.func @transform_0(%arg0: i32) -> (i32, i32) {
    %c0_i32 = arith.constant 0 : i32
    %c0_i32_0 = arith.constant 0 : i32
    return %arg0, %c0_i32 : i32, i32
  }
  func.func @transform_1(%arg0: i32) -> (i32, i32) {
    %c0_i32 = arith.constant 0 : i32
    %c0_i32_0 = arith.constant 0 : i32
    %c0_i32_1 = arith.constant 0 : i32
    return %c0_i32, %c0_i32_0 : i32, i32
  }
  func.func @transform_2(%arg0: i32) -> (i32, i32) {
    %c0_i32 = arith.constant 0 : i32
    %c0_i32_0 = arith.constant 0 : i32
    %c0_i32_1 = arith.constant 0 : i32
    return %c0_i32, %c0_i32_0 : i32, i32
  }
  func.func @transform_3(%arg0: i32) -> (i32, i32) {
    %c0_i32 = arith.constant 0 : i32
    %c0_i32_0 = arith.constant 0 : i32
    %c0_i32_1 = arith.constant 0 : i32
    return %c0_i32, %c0_i32_0 : i32, i32
  }
  func.func @transform_4(%arg0: i32) -> (i32, i32) {
    %c0_i32 = arith.constant 0 : i32
    %c0_i32_0 = arith.constant 0 : i32
    return %arg0, %c0_i32 : i32, i32
  }
}

module attributes {stable_mosaic.version = 11 : i64} {
  func.func @_conv_gemm_bn_relu_kernel(%arg0: i32, %arg1: memref<32x288xbf16, #tpu.memory_space<vmem>>, %arg2: memref<288x128xbf16, #tpu.memory_space<vmem>>, %arg3: memref<1x128xf32, #tpu.memory_space<vmem>>, %arg4: memref<1x128xf32, #tpu.memory_space<vmem>>, %arg5: memref<32x128xf32, #tpu.memory_space<vmem>>) attributes {dimension_semantics = [#tpu.dimension_semantics<parallel>], iteration_bounds = array<i64: 1>, scalar_prefetch = 0 : i64, scratch_operands = 0 : i64, tpu.core_type = #tpu.core_type<tc>, window_params = [{transform_indices = @transform_0, window_bounds = array<i64: 32, 288>}, {pipeline_mode = #tpu.pipeline_mode<synchronous>, transform_indices = @transform_1, window_bounds = array<i64: 288, 128>}, {pipeline_mode = #tpu.pipeline_mode<synchronous>, transform_indices = @transform_2, window_bounds = array<i64: 1, 128>}, {pipeline_mode = #tpu.pipeline_mode<synchronous>, transform_indices = @transform_3, window_bounds = array<i64: 1, 128>}, {transform_indices = @transform_4, window_bounds = array<i64: 32, 128>}]} {
    %c0 = arith.constant 0 : index
    %c0_0 = arith.constant 0 : index
    %0 = vector.load %arg1[%c0, %c0_0] : memref<32x288xbf16, #tpu.memory_space<vmem>>, vector<32x288xbf16>
    %c0_1 = arith.constant 0 : index
    %c0_2 = arith.constant 0 : index
    %1 = vector.load %arg2[%c0_1, %c0_2] : memref<288x128xbf16, #tpu.memory_space<vmem>>, vector<288x128xbf16>
    %cst = arith.constant dense<0.000000e+00> : vector<32x128xf32>
    %2 = tpu.matmul %0, %1, %cst {dimension_numbers = #tpu.dot_dimension_numbers<[1], [0], [0], [1], [0, 0, 1, 1], [], []>} : vector<32x288xbf16>, vector<288x128xbf16>, vector<32x128xf32> -> vector<32x128xf32>
    %c0_3 = arith.constant 0 : index
    %c0_4 = arith.constant 0 : index
    %3 = vector.load %arg3[%c0_3, %c0_4] : memref<1x128xf32, #tpu.memory_space<vmem>>, vector<1x128xf32>
    %4 = vector.broadcast %3 : vector<1x128xf32> to vector<32x128xf32>
    %5 = arith.mulf %2, %4 : vector<32x128xf32>
    %c0_5 = arith.constant 0 : index
    %c0_6 = arith.constant 0 : index
    %6 = vector.load %arg4[%c0_5, %c0_6] : memref<1x128xf32, #tpu.memory_space<vmem>>, vector<1x128xf32>
    %7 = vector.broadcast %6 : vector<1x128xf32> to vector<32x128xf32>
    %8 = arith.addf %5, %7 : vector<32x128xf32>
    %cst_7 = arith.constant 0.000000e+00 : f32
    %9 = vector.broadcast %cst_7 : f32 to vector<32x128xf32>
    %10 = arith.maximumf %8, %9 : vector<32x128xf32>
    %c0_8 = arith.constant 0 : index
    %c0_9 = arith.constant 0 : index
    %11 = vector.load %arg5[%c0_8, %c0_9] : memref<32x128xf32, #tpu.memory_space<vmem>>, vector<32x128xf32>
    tpu.vector_store %arg5[%c0_8, %c0_9], %10 {strides = array<i32>} : memref<32x128xf32, #tpu.memory_space<vmem>>, vector<32x128xf32>,
    return
  }
  func.func @transform_0(%arg0: i32) -> (i32, i32) {
    %c0_i32 = arith.constant 0 : i32
    %c0_i32_0 = arith.constant 0 : i32
    return %arg0, %c0_i32 : i32, i32
  }
  func.func @transform_1(%arg0: i32) -> (i32, i32) {
    %c0_i32 = arith.constant 0 : i32
    %c0_i32_0 = arith.constant 0 : i32
    %c0_i32_1 = arith.constant 0 : i32
    return %c0_i32, %c0_i32_0 : i32, i32
  }
  func.func @transform_2(%arg0: i32) -> (i32, i32) {
    %c0_i32 = arith.constant 0 : i32
    %c0_i32_0 = arith.constant 0 : i32
    %c0_i32_1 = arith.constant 0 : i32
    return %c0_i32, %c0_i32_0 : i32, i32
  }
  func.func @transform_3(%arg0: i32) -> (i32, i32) {
    %c0_i32 = arith.constant 0 : i32
    %c0_i32_0 = arith.constant 0 : i32
    %c0_i32_1 = arith.constant 0 : i32
    return %c0_i32, %c0_i32_0 : i32, i32
  }
  func.func @transform_4(%arg0: i32) -> (i32, i32) {
    %c0_i32 = arith.constant 0 : i32
    %c0_i32_0 = arith.constant 0 : i32
    return %arg0, %c0_i32 : i32, i32
  }
}

module attributes {stable_mosaic.version = 11 : i64} {
  func.func @_conv_gemm_bn_relu_kernel(%arg0: i32, %arg1: memref<8x288xbf16, #tpu.memory_space<vmem>>, %arg2: memref<288x128xbf16, #tpu.memory_space<vmem>>, %arg3: memref<1x128xf32, #tpu.memory_space<vmem>>, %arg4: memref<1x128xf32, #tpu.memory_space<vmem>>, %arg5: memref<8x128xf32, #tpu.memory_space<vmem>>) attributes {dimension_semantics = [#tpu.dimension_semantics<parallel>], iteration_bounds = array<i64: 1>, scalar_prefetch = 0 : i64, scratch_operands = 0 : i64, tpu.core_type = #tpu.core_type<tc>, window_params = [{transform_indices = @transform_0, window_bounds = array<i64: 8, 288>}, {pipeline_mode = #tpu.pipeline_mode<synchronous>, transform_indices = @transform_1, window_bounds = array<i64: 288, 128>}, {pipeline_mode = #tpu.pipeline_mode<synchronous>, transform_indices = @transform_2, window_bounds = array<i64: 1, 128>}, {pipeline_mode = #tpu.pipeline_mode<synchronous>, transform_indices = @transform_3, window_bounds = array<i64: 1, 128>}, {transform_indices = @transform_4, window_bounds = array<i64: 8, 128>}]} {
    %c0 = arith.constant 0 : index
    %c0_0 = arith.constant 0 : index
    %0 = vector.load %arg1[%c0, %c0_0] : memref<8x288xbf16, #tpu.memory_space<vmem>>, vector<8x288xbf16>
    %c0_1 = arith.constant 0 : index
    %c0_2 = arith.constant 0 : index
    %1 = vector.load %arg2[%c0_1, %c0_2] : memref<288x128xbf16, #tpu.memory_space<vmem>>, vector<288x128xbf16>
    %cst = arith.constant dense<0.000000e+00> : vector<8x128xf32>
    %2 = tpu.matmul %0, %1, %cst {dimension_numbers = #tpu.dot_dimension_numbers<[1], [0], [0], [1], [0, 0, 1, 1], [], []>} : vector<8x288xbf16>, vector<288x128xbf16>, vector<8x128xf32> -> vector<8x128xf32>
    %c0_3 = arith.constant 0 : index
    %c0_4 = arith.constant 0 : index
    %3 = vector.load %arg3[%c0_3, %c0_4] : memref<1x128xf32, #tpu.memory_space<vmem>>, vector<1x128xf32>
    %4 = vector.broadcast %3 : vector<1x128xf32> to vector<8x128xf32>
    %5 = arith.mulf %2, %4 : vector<8x128xf32>
    %c0_5 = arith.constant 0 : index
    %c0_6 = arith.constant 0 : index
    %6 = vector.load %arg4[%c0_5, %c0_6] : memref<1x128xf32, #tpu.memory_space<vmem>>, vector<1x128xf32>
    %7 = vector.broadcast %6 : vector<1x128xf32> to vector<8x128xf32>
    %8 = arith.addf %5, %7 : vector<8x128xf32>
    %cst_7 = arith.constant 0.000000e+00 : f32
    %9 = vector.broadcast %cst_7 : f32 to vector<8x128xf32>
    %10 = arith.maximumf %8, %9 : vector<8x128xf32>
    %c0_8 = arith.constant 0 : index
    %c0_9 = arith.constant 0 : index
    %11 = vector.load %arg5[%c0_8, %c0_9] : memref<8x128xf32, #tpu.memory_space<vmem>>, vector<8x128xf32>
    tpu.vector_store %arg5[%c0_8, %c0_9], %10 {strides = array<i32>} : memref<8x128xf32, #tpu.memory_space<vmem>>, vector<8x128xf32>,
    return
  }
  func.func @transform_0(%arg0: i32) -> (i32, i32) {
    %c0_i32 = arith.constant 0 : i32
    %c0_i32_0 = arith.constant 0 : i32
    return %arg0, %c0_i32 : i32, i32
  }
  func.func @transform_1(%arg0: i32) -> (i32, i32) {
    %c0_i32 = arith.constant 0 : i32
    %c0_i32_0 = arith.constant 0 : i32
    %c0_i32_1 = arith.constant 0 : i32
    return %c0_i32, %c0_i32_0 : i32, i32
  }
  func.func @transform_2(%arg0: i32) -> (i32, i32) {
    %c0_i32 = arith.constant 0 : i32
    %c0_i32_0 = arith.constant 0 : i32
    %c0_i32_1 = arith.constant 0 : i32
    return %c0_i32, %c0_i32_0 : i32, i32
  }
  func.func @transform_3(%arg0: i32) -> (i32, i32) {
    %c0_i32 = arith.constant 0 : i32
    %c0_i32_0 = arith.constant 0 : i32
    %c0_i32_1 = arith.constant 0 : i32
    return %c0_i32, %c0_i32_0 : i32, i32
  }
  func.func @transform_4(%arg0: i32) -> (i32, i32) {
    %c0_i32 = arith.constant 0 : i32
    %c0_i32_0 = arith.constant 0 : i32
    return %arg0, %c0_i32 : i32, i32
  }
}

module attributes {stable_mosaic.version = 11 : i64} {
  func.func @_conv_gemm_bn_relu_kernel(%arg0: i32, %arg1: memref<8x576xbf16, #tpu.memory_space<vmem>>, %arg2: memref<576x128xbf16, #tpu.memory_space<vmem>>, %arg3: memref<1x128xf32, #tpu.memory_space<vmem>>, %arg4: memref<1x128xf32, #tpu.memory_space<vmem>>, %arg5: memref<8x128xf32, #tpu.memory_space<vmem>>) attributes {dimension_semantics = [#tpu.dimension_semantics<parallel>], iteration_bounds = array<i64: 1>, scalar_prefetch = 0 : i64, scratch_operands = 0 : i64, tpu.core_type = #tpu.core_type<tc>, window_params = [{transform_indices = @transform_0, window_bounds = array<i64: 8, 576>}, {pipeline_mode = #tpu.pipeline_mode<synchronous>, transform_indices = @transform_1, window_bounds = array<i64: 576, 128>}, {pipeline_mode = #tpu.pipeline_mode<synchronous>, transform_indices = @transform_2, window_bounds = array<i64: 1, 128>}, {pipeline_mode = #tpu.pipeline_mode<synchronous>, transform_indices = @transform_3, window_bounds = array<i64: 1, 128>}, {transform_indices = @transform_4, window_bounds = array<i64: 8, 128>}]} {
    %c0 = arith.constant 0 : index
    %c0_0 = arith.constant 0 : index
    %0 = vector.load %arg1[%c0, %c0_0] : memref<8x576xbf16, #tpu.memory_space<vmem>>, vector<8x576xbf16>
    %c0_1 = arith.constant 0 : index
    %c0_2 = arith.constant 0 : index
    %1 = vector.load %arg2[%c0_1, %c0_2] : memref<576x128xbf16, #tpu.memory_space<vmem>>, vector<576x128xbf16>
    %cst = arith.constant dense<0.000000e+00> : vector<8x128xf32>
    %2 = tpu.matmul %0, %1, %cst {dimension_numbers = #tpu.dot_dimension_numbers<[1], [0], [0], [1], [0, 0, 1, 1], [], []>} : vector<8x576xbf16>, vector<576x128xbf16>, vector<8x128xf32> -> vector<8x128xf32>
    %c0_3 = arith.constant 0 : index
    %c0_4 = arith.constant 0 : index
    %3 = vector.load %arg3[%c0_3, %c0_4] : memref<1x128xf32, #tpu.memory_space<vmem>>, vector<1x128xf32>
    %4 = vector.broadcast %3 : vector<1x128xf32> to vector<8x128xf32>
    %5 = arith.mulf %2, %4 : vector<8x128xf32>
    %c0_5 = arith.constant 0 : index
    %c0_6 = arith.constant 0 : index
    %6 = vector.load %arg4[%c0_5, %c0_6] : memref<1x128xf32, #tpu.memory_space<vmem>>, vector<1x128xf32>
    %7 = vector.broadcast %6 : vector<1x128xf32> to vector<8x128xf32>
    %8 = arith.addf %5, %7 : vector<8x128xf32>
    %cst_7 = arith.constant 0.000000e+00 : f32
    %9 = vector.broadcast %cst_7 : f32 to vector<8x128xf32>
    %10 = arith.maximumf %8, %9 : vector<8x128xf32>
    %c0_8 = arith.constant 0 : index
    %c0_9 = arith.constant 0 : index
    %11 = vector.load %arg5[%c0_8, %c0_9] : memref<8x128xf32, #tpu.memory_space<vmem>>, vector<8x128xf32>
    tpu.vector_store %arg5[%c0_8, %c0_9], %10 {strides = array<i32>} : memref<8x128xf32, #tpu.memory_space<vmem>>, vector<8x128xf32>,
    return
  }
  func.func @transform_0(%arg0: i32) -> (i32, i32) {
    %c0_i32 = arith.constant 0 : i32
    %c0_i32_0 = arith.constant 0 : i32
    return %arg0, %c0_i32 : i32, i32
  }
  func.func @transform_1(%arg0: i32) -> (i32, i32) {
    %c0_i32 = arith.constant 0 : i32
    %c0_i32_0 = arith.constant 0 : i32
    %c0_i32_1 = arith.constant 0 : i32
    return %c0_i32, %c0_i32_0 : i32, i32
  }
  func.func @transform_2(%arg0: i32) -> (i32, i32) {
    %c0_i32 = arith.constant 0 : i32
    %c0_i32_0 = arith.constant 0 : i32
    %c0_i32_1 = arith.constant 0 : i32
    return %c0_i32, %c0_i32_0 : i32, i32
  }
  func.func @transform_3(%arg0: i32) -> (i32, i32) {
    %c0_i32 = arith.constant 0 : i32
    %c0_i32_0 = arith.constant 0 : i32
    %c0_i32_1 = arith.constant 0 : i32
    return %c0_i32, %c0_i32_0 : i32, i32
  }
  func.func @transform_4(%arg0: i32) -> (i32, i32) {
    %c0_i32 = arith.constant 0 : i32
    %c0_i32_0 = arith.constant 0 : i32
    return %arg0, %c0_i32 : i32, i32
  }
}

</mosaic_0001>

<bundles_post_ra>
// kernel: encoder_forward.10
= control target key start
LH: loop header
LB: loop body
LE: loop exit
PB: predicated region body
PF: predicated region fallthrough
CT: control target
= control target key end

     0   :  { %s919_s15 = smov 0   ;;  %s1091_s0 = inlined_call_operand.vmem [shape: bf16[512,36], index: 0, kind: input, shape index: {}]   ;;  %s1092_s1 = inlined_call_operand.vmem [shape: bf16[36,128], index: 1, kind: input, shape index: {}]   ;;  %s1093_s2 = inlined_call_operand.vmem [shape: f32[1,128], index: 2, kind: input, shape index: {}]   ;;  %s1094_s3 = inlined_call_operand.vmem [shape: f32[1,128], index: 3, kind: input, shape index: {}]   ;;  %s1095_s4 = inlined_call_operand.vmem [shape: f32[512,128], index: 4, kind: output, shape index: {}]  }
   0x1 LB: > { %s746_s16 = sadd.s32 4294967295, %s892_s15   ;;  %p750_p0 = scmp.ge.s32.totalorder %s892_s15, 1  ;;  %s892_s15 = sphi %s919_s15, %s14_s15  }
   0x2   : > { %p163_p1 = scmp.lt.s32.totalorder %s892_s15, 3 }
   0x4   : > { %p164_p2 = pnand %p750_p0, %p163_p1 }
   0x5   : > { %s751_s21 = sshll.u32 (!%p164_p2), %s746_s16, 5 }
   0x6   : > { %167 = sbr.rel (%p164_p2) target bundleno = 254 (0xfe), region = 36  ;;  %p190_p3 = scmp.lt.s32.totalorder (!%p164_p2), %s751_s21, 63 }
   0xb   : > { %v867_v0 = vld [vmem:[%s1092_s1 + $0x10] ss:$0 sps:$4 sm:$0x33]   ;;  %vm383_vm0 = vcmask 1041408   ;;  %v868_v1 = vld [vmem:[%s1092_s1 + $0x8] sm:$0xff]   ;;  %v869_v3 = vld [vmem:[%s1092_s1] sm:$0xff]  }
   0xc   : > { %857 = vmatprep.subr.msk.bf16.mxu0 %vm383_vm0, %v867_v0  ;;  %858 = vmatprep.subr.msk.bf16.mxu1 %vm383_vm0, %v867_v0  ;;  %v385_v2 = vsel %vm383_vm0, %v867_v0, 0  ;;  %s1097_s21 = smov (!%p190_p3, %s751_s21), 63  ;;  %vm334_vm1 = vcmask 293888   ;;  %v979_v20 = vld [vmem:[%s1093_s2] ss:$0 sm:$0xff] }
   0xd   : > { %814 = vmatpush3.bf16.msra.mxu0 %v385_v2  ;;  %854 = vmatpush3.bf16.msra.mxu1 %v385_v2  ;;  %s752_s24 = sshll.u32 %s1097_s21, 2  ;;  %v984_v22 = vld [vmem:[%s1094_s3] ss:$0 sm:$0xff]  ;;  %s754_s6 = sshll.u32 %s1097_s21, 3 }
   0xe   : > { %815 = vmatprep.subr.bf16.mxu0 %v868_v1  ;;  %852 = vmatprep.subr.bf16.mxu1 %v868_v1  ;;  %s942_s27 = scalar_lea.vmem %s1091_s0, %s752_s24  ;;  %s996_s9 = scalar_lea.vmem %s1095_s4, %s754_s6 }
   0xf   : > { %v870_v4 = vld [vmem:[%s942_s27] sm:$0xff]   ;;  %v872_v6 = vld [vmem:[%s942_s27 + $0x8] sm:$0xff]   ;;  %v874_v8 = vld [vmem:[%s942_s27 + $0x10] sm:$0xff]  }
  0x10   : > { %v871_v5 = vld [vmem:[%s942_s27 + $0x40] sm:$0xff]   ;;  %819 = vmatprep.mubr.msk.bf16.mxu0 %vm334_vm1, %v870_v4  ;;  %v873_v7 = vld [vmem:[%s942_s27 + $0x48] sm:$0xff]   ;;  %v875_v9 = vld [vmem:[%s942_s27 + $0x50] sm:$0xff]  }
  0x11   : > { %816 = vmatpush3.bf16.msra.mxu0 %v868_v1  ;;  %855 = vmatpush3.bf16.msra.mxu1 %v868_v1  ;;  %v876_v10 = vld [vmem:[%s942_s27 + $0x18] sm:$0xff]   ;;  %v878_v12 = vld [vmem:[%s942_s27 + $0x20] sm:$0xff]   ;;  %v880_v14 = vld [vmem:[%s942_s27 + $0x28] sm:$0xff]  }
  0x12   : > { %817 = vmatprep.subr.bf16.mxu0 %v869_v3  ;;  %853 = vmatprep.subr.bf16.mxu1 %v869_v3  ;;  %v877_v11 = vld [vmem:[%s942_s27 + $0x58] sm:$0xff]   ;;  %v879_v13 = vld [vmem:[%s942_s27 + $0x60] sm:$0xff]   ;;  %v881_v15 = vld [vmem:[%s942_s27 + $0x68] sm:$0xff]  }
  0x13   : > { %835 = vmatprep.mubr.msk.bf16.mxu1 %vm334_vm1, %v871_v5  ;;  %v882_v16 = vld [vmem:[%s942_s27 + $0x30] sm:$0xff]   ;;  %v884_v18 = vld [vmem:[%s942_s27 + $0x38] sm:$0xff]  }
  0x14   : > { %v883_v17 = vld [vmem:[%s942_s27 + $0x70] sm:$0xff]   ;;  %v885_v19 = vld [vmem:[%s942_s27 + $0x78] sm:$0xff]  }
  0x15   : > { %818 = vmatpush3.bf16.msra.mxu0 %v869_v3  ;;  %856 = vmatpush3.bf16.msra.mxu1 %v869_v3 }
  0x18   : > { %820 = vmatmul.mubr.msk.bf16.vlgmr.msra.gmra.mxu0 %vm334_vm1, %v872_v6  ;;  %836 = vmatmul.mubr.msk.bf16.vlgmr.msra.gmra.mxu1 %vm334_vm1, %v873_v7 }
  0x19   : > { %823 = vmatprep.mubr.msk.bf16.mxu0 %vm334_vm1, %v874_v8  ;;  %839 = vmatprep.mubr.msk.bf16.mxu1 %vm334_vm1, %v875_v9 }
  0x20   : > { %824 = vmatmul.mubr.msk.bf16.gmra.mxu0 %vm334_vm1, %v876_v10  ;;  %840 = vmatmul.mubr.msk.bf16.gmra.mxu1 %vm334_vm1, %v877_v11 }
  0x21   : > { %827 = vmatprep.mubr.msk.bf16.mxu0 %vm334_vm1, %v878_v12  ;;  %843 = vmatprep.mubr.msk.bf16.mxu1 %vm334_vm1, %v879_v13 }
  0x28   : > { %828 = vmatmul.mubr.msk.bf16.gmra.mxu0 %vm334_vm1, %v880_v14  ;;  %844 = vmatmul.mubr.msk.bf16.gmra.mxu1 %vm334_vm1, %v881_v15 }
  0x29   : > { %831 = vmatprep.mubr.msk.bf16.mxu0 %vm334_vm1, %v882_v16  ;;  %847 = vmatprep.mubr.msk.bf16.mxu1 %vm334_vm1, %v883_v17 }
  0x30   : > { %832 = vmatmul.mubr.msk.bf16.gmra.mxu0 %vm334_vm1, %v884_v18  ;;  %848 = vmatmul.mubr.msk.bf16.gmra.mxu1 %vm334_vm1, %v885_v19 }
  0xd8   : > { %v821_v21 = vpop.f32.mrf.mxu0  ;;  %v837_v23 = vpop.f32.mrf.mxu1 }
  0xd9   : > { %v557_v24 = vmul.f32 %v821_v21, %v979_v20  ;;  %v573_v25 = vmul.f32 %v837_v23, %v979_v20 }
  0xda   : > { %v421_v26 = vpop.f32.mrf.mxu0  ;;  %v485_v27 = vpop.f32.mrf.mxu1 }
  0xdb   : > { %v596_v28 = vadd.f32 %v984_v22, %v557_v24  ;;  %v612_v29 = vadd.f32 %v984_v22, %v573_v25  ;;  %v555_v30 = vmul.f32 %v979_v20, %v421_v26  ;;  %v571_v31 = vmul.f32 %v979_v20, %v485_v27 }
  0xdc   : > { %v822_v32 = vpop.f32.mrf.mxu0  ;;  %v838_v33 = vpop.f32.mrf.mxu1 }
  0xdd   : > { %v628_v34 = vmax.f32 %v596_v28, 0.0  ;;  %v644_v35 = vmax.f32 %v612_v29, 0.0  ;;  %v594_v36 = vadd.f32 %v984_v22, %v555_v30  ;;  %v610_v37 = vadd.f32 %v984_v22, %v571_v31 }
  0xde   : > { %v558_v38 = vmul.f32 %v822_v32, %v979_v20  ;;  %v574_v39 = vmul.f32 %v838_v33, %v979_v20  ;;  %v424_v40 = vpop.f32.mrf.mxu0  ;;  %v488_v41 = vpop.f32.mrf.mxu1 }
  0xdf   : > { %660 = vst [vmem:[%s996_s9 + $0x10] sm:$0xff] %v628_v34  ;;  %676 = vst [vmem:[%s996_s9 + $0x90] sm:$0xff] %v644_v35  ;;  %v626_v42 = vmax.f32 %v594_v36, 0.0  ;;  %v642_v43 = vmax.f32 %v610_v37, 0.0  ;;  %v556_v44 = vmul.f32 %v979_v20, %v424_v40  ;;  %v572_v45 = vmul.f32 %v979_v20, %v488_v41 }
  0xe0   : > { %v597_v46 = vadd.f32 %v984_v22, %v558_v38  ;;  %v613_v47 = vadd.f32 %v984_v22, %v574_v39  ;;  %v825_v48 = vpop.f32.mrf.mxu0  ;;  %v841_v49 = vpop.f32.mrf.mxu1 }
  0xe1   : > { %658 = vst [vmem:[%s996_s9] sm:$0xff] %v626_v42  ;;  %674 = vst [vmem:[%s996_s9 + $0x80] sm:$0xff] %v642_v43  ;;  %v595_v50 = vadd.f32 %v984_v22, %v556_v44  ;;  %v611_v51 = vadd.f32 %v984_v22, %v572_v45  ;;  %v561_v52 = vmul.f32 %v825_v48, %v979_v20 }
  0xe2   : > { %v577_v53 = vmul.f32 %v841_v49, %v979_v20  ;;  %v629_v54 = vmax.f32 %v597_v46, 0.0  ;;  %v645_v55 = vmax.f32 %v613_v47, 0.0  ;;  %v437_v56 = vpop.f32.mrf.mxu0  ;;  %v501_v57 = vpop.f32.mrf.mxu1 }
  0xe3   : > { %v627_v58 = vmax.f32 %v595_v50, 0.0  ;;  %v643_v59 = vmax.f32 %v611_v51, 0.0  ;;  %v600_v60 = vadd.f32 %v984_v22, %v561_v52  ;;  %v559_v62 = vmul.f32 %v979_v20, %v437_v56 }
  0xe4   : > { %v616_v61 = vadd.f32 %v984_v22, %v577_v53  ;;  %661 = vst [vmem:[%s996_s9 + $0x18] sm:$0xff] %v629_v54  ;;  %677 = vst [vmem:[%s996_s9 + $0x98] sm:$0xff] %v645_v55  ;;  %v575_v63 = vmul.f32 %v979_v20, %v501_v57  ;;  %v826_v0 = vpop.f32.mrf.mxu0  ;;  %v842_v1 = vpop.f32.mrf.mxu1 }
  0xe5   : > { %659 = vst [vmem:[%s996_s9 + $0x8] sm:$0xff] %v627_v58  ;;  %675 = vst [vmem:[%s996_s9 + $0x88] sm:$0xff] %v643_v59  ;;  %v632_v2 = vmax.f32 %v600_v60, 0.0  ;;  %v562_v4 = vmul.f32 %v826_v0, %v979_v20  ;;  %v578_v5 = vmul.f32 %v842_v1, %v979_v20  ;;  %v598_v6 = vadd.f32 %v984_v22, %v559_v62 }
  0xe6   : > { %v648_v3 = vmax.f32 %v616_v61, 0.0  ;;  %v614_v7 = vadd.f32 %v984_v22, %v575_v63  ;;  %v440_v8 = vpop.f32.mrf.mxu0  ;;  %v504_v9 = vpop.f32.mrf.mxu1 }
  0xe7   : > { %664 = vst [vmem:[%s996_s9 + $0x30] sm:$0xff] %v632_v2  ;;  %v601_v10 = vadd.f32 %v984_v22, %v562_v4  ;;  %v617_v11 = vadd.f32 %v984_v22, %v578_v5  ;;  %v560_v12 = vmul.f32 %v979_v20, %v440_v8  ;;  %v576_v13 = vmul.f32 %v979_v20, %v504_v9 }
  0xe8   : > { %680 = vst [vmem:[%s996_s9 + $0xb0] sm:$0xff] %v648_v3  ;;  %v630_v14 = vmax.f32 %v598_v6, 0.0  ;;  %v646_v15 = vmax.f32 %v614_v7, 0.0  ;;  %v829_v16 = vpop.f32.mrf.mxu0  ;;  %v845_v17 = vpop.f32.mrf.mxu1 }
  0xe9   : > { %v633_v18 = vmax.f32 %v601_v10, 0.0  ;;  %v649_v19 = vmax.f32 %v617_v11, 0.0  ;;  %v599_v21 = vadd.f32 %v984_v22, %v560_v12  ;;  %v615_v23 = vadd.f32 %v984_v22, %v576_v13 }
  0xea   : > { %662 = vst [vmem:[%s996_s9 + $0x20] sm:$0xff] %v630_v14  ;;  %678 = vst [vmem:[%s996_s9 + $0xa0] sm:$0xff] %v646_v15  ;;  %v565_v24 = vmul.f32 %v829_v16, %v979_v20  ;;  %v581_v25 = vmul.f32 %v845_v17, %v979_v20  ;;  %v453_v26 = vpop.f32.mrf.mxu0  ;;  %v517_v27 = vpop.f32.mrf.mxu1 }
  0xeb   : > { %665 = vst [vmem:[%s996_s9 + $0x38] sm:$0xff] %v633_v18  ;;  %681 = vst [vmem:[%s996_s9 + $0xb8] sm:$0xff] %v649_v19  ;;  %v631_v28 = vmax.f32 %v599_v21, 0.0  ;;  %v647_v29 = vmax.f32 %v615_v23, 0.0  ;;  %v563_v30 = vmul.f32 %v979_v20, %v453_v26  ;;  %v579_v31 = vmul.f32 %v979_v20, %v517_v27 }
  0xec   : > { %v604_v32 = vadd.f32 %v984_v22, %v565_v24  ;;  %v620_v33 = vadd.f32 %v984_v22, %v581_v25  ;;  %v830_v34 = vpop.f32.mrf.mxu0  ;;  %v846_v35 = vpop.f32.mrf.mxu1 }
  0xed   : > { %663 = vst [vmem:[%s996_s9 + $0x28] sm:$0xff] %v631_v28  ;;  %679 = vst [vmem:[%s996_s9 + $0xa8] sm:$0xff] %v647_v29  ;;  %v602_v36 = vadd.f32 %v984_v22, %v563_v30  ;;  %v618_v37 = vadd.f32 %v984_v22, %v579_v31  ;;  %v566_v38 = vmul.f32 %v830_v34, %v979_v20 }
  0xee   : > { %v582_v39 = vmul.f32 %v846_v35, %v979_v20  ;;  %v636_v40 = vmax.f32 %v604_v32, 0.0  ;;  %v652_v41 = vmax.f32 %v620_v33, 0.0  ;;  %v456_v42 = vpop.f32.mrf.mxu0  ;;  %v520_v43 = vpop.f32.mrf.mxu1 }
  0xef   : > { %v634_v44 = vmax.f32 %v602_v36, 0.0  ;;  %v650_v45 = vmax.f32 %v618_v37, 0.0  ;;  %v605_v46 = vadd.f32 %v984_v22, %v566_v38  ;;  %v564_v48 = vmul.f32 %v979_v20, %v456_v42 }
  0xf0   : > { %v621_v47 = vadd.f32 %v984_v22, %v582_v39  ;;  %668 = vst [vmem:[%s996_s9 + $0x50] sm:$0xff] %v636_v40  ;;  %684 = vst [vmem:[%s996_s9 + $0xd0] sm:$0xff] %v652_v41  ;;  %v580_v49 = vmul.f32 %v979_v20, %v520_v43  ;;  %v833_v50 = vpop.f32.mrf.mxu0  ;;  %v849_v51 = vpop.f32.mrf.mxu1 }
  0xf1   : > { %666 = vst [vmem:[%s996_s9 + $0x40] sm:$0xff] %v634_v44  ;;  %682 = vst [vmem:[%s996_s9 + $0xc0] sm:$0xff] %v650_v45  ;;  %v637_v52 = vmax.f32 %v605_v46, 0.0  ;;  %v569_v54 = vmul.f32 %v833_v50, %v979_v20  ;;  %v585_v55 = vmul.f32 %v849_v51, %v979_v20  ;;  %v603_v56 = vadd.f32 %v984_v22, %v564_v48 }
  0xf2   : > { %v653_v53 = vmax.f32 %v621_v47, 0.0  ;;  %v619_v57 = vadd.f32 %v984_v22, %v580_v49  ;;  %v469_v58 = vpop.f32.mrf.mxu0  ;;  %v533_v59 = vpop.f32.mrf.mxu1 }
  0xf3   : > { %669 = vst [vmem:[%s996_s9 + $0x58] sm:$0xff] %v637_v52  ;;  %v608_v60 = vadd.f32 %v984_v22, %v569_v54  ;;  %v624_v61 = vadd.f32 %v984_v22, %v585_v55  ;;  %v567_v62 = vmul.f32 %v979_v20, %v469_v58  ;;  %v583_v63 = vmul.f32 %v979_v20, %v533_v59 }
  0xf4   : > { %685 = vst [vmem:[%s996_s9 + $0xd8] sm:$0xff] %v653_v53  ;;  %v635_v0 = vmax.f32 %v603_v56, 0.0  ;;  %v651_v1 = vmax.f32 %v619_v57, 0.0  ;;  %v834_v2 = vpop.f32.mrf.mxu0  ;;  %v850_v3 = vpop.f32.mrf.mxu1 }
  0xf5   : > { %v640_v4 = vmax.f32 %v608_v60, 0.0  ;;  %v656_v5 = vmax.f32 %v624_v61, 0.0  ;;  %v606_v6 = vadd.f32 %v984_v22, %v567_v62  ;;  %v622_v7 = vadd.f32 %v984_v22, %v583_v63 }
  0xf6   : > { %667 = vst [vmem:[%s996_s9 + $0x48] sm:$0xff] %v635_v0  ;;  %683 = vst [vmem:[%s996_s9 + $0xc8] sm:$0xff] %v651_v1  ;;  %v570_v8 = vmul.f32 %v834_v2, %v979_v20  ;;  %v586_v9 = vmul.f32 %v850_v3, %v979_v20  ;;  %v472_v10 = vpop.f32.mrf.mxu0  ;;  %v536_v11 = vpop.f32.mrf.mxu1 }
  0xf7   : > { %672 = vst [vmem:[%s996_s9 + $0x70] sm:$0xff] %v640_v4  ;;  %688 = vst [vmem:[%s996_s9 + $0xf0] sm:$0xff] %v656_v5  ;;  %v638_v12 = vmax.f32 %v606_v6, 0.0  ;;  %v654_v13 = vmax.f32 %v622_v7, 0.0  ;;  %v568_v14 = vmul.f32 %v979_v20, %v472_v10  ;;  %v584_v15 = vmul.f32 %v979_v20, %v536_v11 }
  0xf8   : > { %v609_v16 = vadd.f32 %v984_v22, %v570_v8  ;;  %v625_v17 = vadd.f32 %v984_v22, %v586_v9 }
  0xf9   : > { %670 = vst [vmem:[%s996_s9 + $0x60] sm:$0xff] %v638_v12  ;;  %686 = vst [vmem:[%s996_s9 + $0xe0] sm:$0xff] %v654_v13  ;;  %v607_v18 = vadd.f32 %v984_v22, %v568_v14  ;;  %v623_v19 = vadd.f32 %v984_v22, %v584_v15 }
  0xfa   : > { %v641_v21 = vmax.f32 %v609_v16, 0.0  ;;  %v657_v23 = vmax.f32 %v625_v17, 0.0 }
  0xfb   : > { %v639_v24 = vmax.f32 %v607_v18, 0.0  ;;  %v655_v25 = vmax.f32 %v623_v19, 0.0 }
  0xfc   : > { %673 = vst [vmem:[%s996_s9 + $0x78] sm:$0xff] %v641_v21  ;;  %689 = vst [vmem:[%s996_s9 + $0xf8] sm:$0xff] %v657_v23 }
  0xfd   : > { %671 = vst [vmem:[%s996_s9 + $0x68] sm:$0xff] %v639_v24  ;;  %687 = vst [vmem:[%s996_s9 + $0xe8] sm:$0xff] %v655_v25 }
  0xfe PF: > { %s14_s15 = sadd.s32 1, %s892_s15  }
  0xff   : > { %p11_p4 = scmp.ge.s32.totalorder %s14_s15, 4  }
 0x101   :  { %13 = sbr.rel (!%p11_p4) target bundleno = 1 (0x1), region = 66 }

// kernel: encoder_forward.11
= control target key start
LH: loop header
LB: loop body
LE: loop exit
PB: predicated region body
PF: predicated region fallthrough
CT: control target
= control target key end

     0   :  { %s949_s15 = smov 0   ;;  %s1127_s0 = inlined_call_operand.vmem [shape: bf16[512,72], index: 0, kind: input, shape index: {}]   ;;  %s1128_s1 = inlined_call_operand.vmem [shape: bf16[72,128], index: 1, kind: input, shape index: {}]   ;;  %s1129_s2 = inlined_call_operand.vmem [shape: f32[1,128], index: 2, kind: input, shape index: {}]   ;;  %s1130_s3 = inlined_call_operand.vmem [shape: f32[1,128], index: 3, kind: input, shape index: {}]   ;;  %s1131_s4 = inlined_call_operand.vmem [shape: f32[512,128], index: 4, kind: output, shape index: {}]  }
   0x1 LB: > { %s762_s16 = sadd.s32 4294967295, %s922_s15   ;;  %p766_p0 = scmp.ge.s32.totalorder %s922_s15, 1  ;;  %s922_s15 = sphi %s949_s15, %s14_s15  }
   0x2   : > { %p163_p1 = scmp.lt.s32.totalorder %s922_s15, 3 }
   0x4   : > { %p164_p2 = pnand %p766_p0, %p163_p1 }
   0x5   : > { %s767_s21 = sshll.u32 (!%p164_p2), %s762_s16, 5 }
   0x6   : > { %167 = sbr.rel (%p164_p2) target bundleno = 262 (0x106), region = 36  ;;  %p190_p3 = scmp.lt.s32.totalorder (!%p164_p2), %s767_s21, 63 }
   0xb   : > { %v895_v0 = vld [vmem:[%s1128_s1 + $0x20] ss:$0 sps:$4 sm:$0xff]   ;;  %vm399_vm0 = vcmask 1043456   ;;  %v896_v1 = vld [vmem:[%s1128_s1 + $0x18] sm:$0xff]   ;;  %v897_v3 = vld [vmem:[%s1128_s1 + $0x10] sm:$0xff]   ;;  %s1133_s21 = smov (!%p190_p3, %s767_s21), 63 }
   0xc   : > { %885 = vmatprep.subr.msk.bf16.mxu0 %vm399_vm0, %v895_v0  ;;  %886 = vmatprep.subr.msk.bf16.mxu1 %vm399_vm0, %v895_v0  ;;  %v401_v2 = vsel %vm399_vm0, %v895_v0, 0  ;;  %v898_v4 = vld [vmem:[%s1128_s1 + $0x8] sm:$0xff]   ;;  %s768_s26 = sshll.u32 %s1133_s21, 2  ;;  %vm350_vm1 = vcmask 588800   ;;  %v899_v7 = vld [vmem:[%s1128_s1] sm:$0xff]   ;;  %s770_s10 = sshll.u32 %s1133_s21, 3 }
   0xd   : > { %834 = vmatpush3.bf16.msra.mxu0 %v401_v2  ;;  %880 = vmatpush3.bf16.msra.mxu1 %v401_v2  ;;  %s975_s29 = scalar_lea.vmem %s1127_s0, %s768_s26  ;;  %v1015_v22 = vld [vmem:[%s1129_s2] ss:$0 sm:$0xff]  ;;  %s1032_s13 = scalar_lea.vmem %s1131_s4, %s770_s10 }
   0xe   : > { %835 = vmatprep.subr.bf16.mxu0 %v896_v1  ;;  %876 = vmatprep.subr.bf16.mxu1 %v896_v1  ;;  %v900_v5 = vld [vmem:[%s975_s29] sm:$0xff]   ;;  %v902_v8 = vld [vmem:[%s975_s29 + $0x8] sm:$0xff]   ;;  %v904_v10 = vld [vmem:[%s975_s29 + $0x10] sm:$0xff]  }
   0xf   : > { %v901_v6 = vld [vmem:[%s975_s29 + $0x40] sm:$0xff]   ;;  %843 = vmatprep.mubr.msk.bf16.mxu0 %vm350_vm1, %v900_v5  ;;  %v903_v9 = vld [vmem:[%s975_s29 + $0x48] sm:$0xff]   ;;  %v905_v11 = vld [vmem:[%s975_s29 + $0x50] sm:$0xff]  }
  0x10   : > { %859 = vmatprep.mubr.msk.bf16.mxu1 %vm350_vm1, %v901_v6  ;;  %v906_v12 = vld [vmem:[%s975_s29 + $0x18] sm:$0xff]   ;;  %v908_v14 = vld [vmem:[%s975_s29 + $0x20] sm:$0xff]   ;;  %v910_v16 = vld [vmem:[%s975_s29 + $0x28] sm:$0xff]  }
  0x11   : > { %836 = vmatpush3.bf16.msra.mxu0 %v896_v1  ;;  %881 = vmatpush3.bf16.msra.mxu1 %v896_v1  ;;  %v907_v13 = vld [vmem:[%s975_s29 + $0x58] sm:$0xff]   ;;  %v909_v15 = vld [vmem:[%s975_s29 + $0x60] sm:$0xff]   ;;  %v911_v17 = vld [vmem:[%s975_s29 + $0x68] sm:$0xff]  }
  0x12   : > { %837 = vmatprep.subr.bf16.mxu0 %v897_v3  ;;  %877 = vmatprep.subr.bf16.mxu1 %v897_v3  ;;  %v912_v18 = vld [vmem:[%s975_s29 + $0x30] sm:$0xff]   ;;  %v914_v20 = vld [vmem:[%s975_s29 + $0x38] sm:$0xff]   ;;  %v1020_v24 = vld [vmem:[%s1130_s3] ss:$0 sm:$0xff] }
  0x13   : > { %v913_v19 = vld [vmem:[%s975_s29 + $0x70] sm:$0xff]   ;;  %v915_v21 = vld [vmem:[%s975_s29 + $0x78] sm:$0xff]  }
  0x15   : > { %838 = vmatpush3.bf16.msra.mxu0 %v897_v3  ;;  %882 = vmatpush3.bf16.msra.mxu1 %v897_v3 }
  0x16   : > { %839 = vmatprep.subr.bf16.mxu0 %v898_v4  ;;  %878 = vmatprep.subr.bf16.mxu1 %v898_v4 }
  0x19   : > { %840 = vmatpush3.bf16.msra.mxu0 %v898_v4  ;;  %883 = vmatpush3.bf16.msra.mxu1 %v898_v4 }
  0x1a   : > { %841 = vmatprep.subr.bf16.mxu0 %v899_v7  ;;  %879 = vmatprep.subr.bf16.mxu1 %v899_v7 }
  0x1d   : > { %842 = vmatpush3.bf16.msra.mxu0 %v899_v7  ;;  %884 = vmatpush3.bf16.msra.mxu1 %v899_v7 }
  0x20   : > { %844 = vmatmul.mubr.msk.bf16.vlgmr.msra.gmra.mxu0 %vm350_vm1, %v902_v8  ;;  %860 = vmatmul.mubr.msk.bf16.vlgmr.msra.gmra.mxu1 %vm350_vm1, %v903_v9 }
  0x21   : > { %847 = vmatprep.mubr.msk.bf16.mxu0 %vm350_vm1, %v904_v10  ;;  %863 = vmatprep.mubr.msk.bf16.mxu1 %vm350_vm1, %v905_v11 }
  0x28   : > { %848 = vmatmul.mubr.msk.bf16.gmra.mxu0 %vm350_vm1, %v906_v12  ;;  %864 = vmatmul.mubr.msk.bf16.gmra.mxu1 %vm350_vm1, %v907_v13 }
  0x29   : > { %851 = vmatprep.mubr.msk.bf16.mxu0 %vm350_vm1, %v908_v14  ;;  %867 = vmatprep.mubr.msk.bf16.mxu1 %vm350_vm1, %v909_v15 }
  0x30   : > { %852 = vmatmul.mubr.msk.bf16.gmra.mxu0 %vm350_vm1, %v910_v16  ;;  %868 = vmatmul.mubr.msk.bf16.gmra.mxu1 %vm350_vm1, %v911_v17 }
  0x31   : > { %855 = vmatprep.mubr.msk.bf16.mxu0 %vm350_vm1, %v912_v18  ;;  %871 = vmatprep.mubr.msk.bf16.mxu1 %vm350_vm1, %v913_v19 }
  0x38   : > { %856 = vmatmul.mubr.msk.bf16.gmra.mxu0 %vm350_vm1, %v914_v20  ;;  %872 = vmatmul.mubr.msk.bf16.gmra.mxu1 %vm350_vm1, %v915_v21 }
  0xe0   : > { %v845_v23 = vpop.f32.mrf.mxu0  ;;  %v861_v25 = vpop.f32.mrf.mxu1 }
  0xe1   : > { %v573_v26 = vmul.f32 %v845_v23, %v1015_v22  ;;  %v589_v27 = vmul.f32 %v861_v25, %v1015_v22 }
  0xe2   : > { %v437_v28 = vpop.f32.mrf.mxu0  ;;  %v501_v29 = vpop.f32.mrf.mxu1 }
  0xe3   : > { %v612_v30 = vadd.f32 %v1020_v24, %v573_v26  ;;  %v628_v31 = vadd.f32 %v1020_v24, %v589_v27  ;;  %v571_v32 = vmul.f32 %v1015_v22, %v437_v28  ;;  %v587_v33 = vmul.f32 %v1015_v22, %v501_v29 }
  0xe4   : > { %v846_v34 = vpop.f32.mrf.mxu0  ;;  %v862_v35 = vpop.f32.mrf.mxu1 }
  0xe5   : > { %v644_v36 = vmax.f32 %v612_v30, 0.0  ;;  %v660_v37 = vmax.f32 %v628_v31, 0.0  ;;  %v610_v38 = vadd.f32 %v1020_v24, %v571_v32  ;;  %v626_v39 = vadd.f32 %v1020_v24, %v587_v33 }
  0xe6   : > { %v574_v40 = vmul.f32 %v846_v34, %v1015_v22  ;;  %v590_v41 = vmul.f32 %v862_v35, %v1015_v22  ;;  %v440_v42 = vpop.f32.mrf.mxu0  ;;  %v504_v43 = vpop.f32.mrf.mxu1 }
  0xe7   : > { %676 = vst [vmem:[%s1032_s13 + $0x10] sm:$0xff] %v644_v36  ;;  %692 = vst [vmem:[%s1032_s13 + $0x90] sm:$0xff] %v660_v37  ;;  %v642_v44 = vmax.f32 %v610_v38, 0.0  ;;  %v658_v45 = vmax.f32 %v626_v39, 0.0  ;;  %v572_v46 = vmul.f32 %v1015_v22, %v440_v42  ;;  %v588_v47 = vmul.f32 %v1015_v22, %v504_v43 }
  0xe8   : > { %v613_v48 = vadd.f32 %v1020_v24, %v574_v40  ;;  %v629_v49 = vadd.f32 %v1020_v24, %v590_v41  ;;  %v849_v50 = vpop.f32.mrf.mxu0  ;;  %v865_v51 = vpop.f32.mrf.mxu1 }
  0xe9   : > { %674 = vst [vmem:[%s1032_s13] sm:$0xff] %v642_v44  ;;  %690 = vst [vmem:[%s1032_s13 + $0x80] sm:$0xff] %v658_v45  ;;  %v611_v52 = vadd.f32 %v1020_v24, %v572_v46  ;;  %v627_v53 = vadd.f32 %v1020_v24, %v588_v47  ;;  %v577_v54 = vmul.f32 %v849_v50, %v1015_v22 }
  0xea   : > { %v593_v55 = vmul.f32 %v865_v51, %v1015_v22  ;;  %v645_v56 = vmax.f32 %v613_v48, 0.0  ;;  %v661_v57 = vmax.f32 %v629_v49, 0.0  ;;  %v453_v58 = vpop.f32.mrf.mxu0  ;;  %v517_v59 = vpop.f32.mrf.mxu1 }
  0xeb   : > { %v643_v60 = vmax.f32 %v611_v52, 0.0  ;;  %v659_v61 = vmax.f32 %v627_v53, 0.0  ;;  %v616_v62 = vadd.f32 %v1020_v24, %v577_v54  ;;  %v575_v0 = vmul.f32 %v1015_v22, %v453_v58 }
  0xec   : > { %v632_v63 = vadd.f32 %v1020_v24, %v593_v55  ;;  %677 = vst [vmem:[%s1032_s13 + $0x18] sm:$0xff] %v645_v56  ;;  %693 = vst [vmem:[%s1032_s13 + $0x98] sm:$0xff] %v661_v57  ;;  %v591_v1 = vmul.f32 %v1015_v22, %v517_v59  ;;  %v850_v2 = vpop.f32.mrf.mxu0  ;;  %v866_v3 = vpop.f32.mrf.mxu1 }
  0xed   : > { %675 = vst [vmem:[%s1032_s13 + $0x8] sm:$0xff] %v643_v60  ;;  %691 = vst [vmem:[%s1032_s13 + $0x88] sm:$0xff] %v659_v61  ;;  %v648_v4 = vmax.f32 %v616_v62, 0.0  ;;  %v578_v6 = vmul.f32 %v850_v2, %v1015_v22  ;;  %v594_v7 = vmul.f32 %v866_v3, %v1015_v22  ;;  %v614_v8 = vadd.f32 %v1020_v24, %v575_v0 }
  0xee   : > { %v664_v5 = vmax.f32 %v632_v63, 0.0  ;;  %v630_v9 = vadd.f32 %v1020_v24, %v591_v1  ;;  %v456_v10 = vpop.f32.mrf.mxu0  ;;  %v520_v11 = vpop.f32.mrf.mxu1 }
  0xef   : > { %680 = vst [vmem:[%s1032_s13 + $0x30] sm:$0xff] %v648_v4  ;;  %v617_v12 = vadd.f32 %v1020_v24, %v578_v6  ;;  %v633_v13 = vadd.f32 %v1020_v24, %v594_v7  ;;  %v576_v14 = vmul.f32 %v1015_v22, %v456_v10  ;;  %v592_v15 = vmul.f32 %v1015_v22, %v520_v11 }
  0xf0   : > { %696 = vst [vmem:[%s1032_s13 + $0xb0] sm:$0xff] %v664_v5  ;;  %v646_v16 = vmax.f32 %v614_v8, 0.0  ;;  %v662_v17 = vmax.f32 %v630_v9, 0.0  ;;  %v853_v18 = vpop.f32.mrf.mxu0  ;;  %v869_v19 = vpop.f32.mrf.mxu1 }
  0xf1   : > { %v649_v20 = vmax.f32 %v617_v12, 0.0  ;;  %v665_v21 = vmax.f32 %v633_v13, 0.0  ;;  %v615_v23 = vadd.f32 %v1020_v24, %v576_v14  ;;  %v631_v25 = vadd.f32 %v1020_v24, %v592_v15 }
  0xf2   : > { %678 = vst [vmem:[%s1032_s13 + $0x20] sm:$0xff] %v646_v16  ;;  %694 = vst [vmem:[%s1032_s13 + $0xa0] sm:$0xff] %v662_v17  ;;  %v581_v26 = vmul.f32 %v853_v18, %v1015_v22  ;;  %v597_v27 = vmul.f32 %v869_v19, %v1015_v22  ;;  %v469_v28 = vpop.f32.mrf.mxu0  ;;  %v533_v29 = vpop.f32.mrf.mxu1 }
  0xf3   : > { %681 = vst [vmem:[%s1032_s13 + $0x38] sm:$0xff] %v649_v20  ;;  %697 = vst [vmem:[%s1032_s13 + $0xb8] sm:$0xff] %v665_v21  ;;  %v647_v30 = vmax.f32 %v615_v23, 0.0  ;;  %v663_v31 = vmax.f32 %v631_v25, 0.0  ;;  %v579_v32 = vmul.f32 %v1015_v22, %v469_v28  ;;  %v595_v33 = vmul.f32 %v1015_v22, %v533_v29 }
  0xf4   : > { %v620_v34 = vadd.f32 %v1020_v24, %v581_v26  ;;  %v636_v35 = vadd.f32 %v1020_v24, %v597_v27  ;;  %v854_v36 = vpop.f32.mrf.mxu0  ;;  %v870_v37 = vpop.f32.mrf.mxu1 }
  0xf5   : > { %679 = vst [vmem:[%s1032_s13 + $0x28] sm:$0xff] %v647_v30  ;;  %695 = vst [vmem:[%s1032_s13 + $0xa8] sm:$0xff] %v663_v31  ;;  %v618_v38 = vadd.f32 %v1020_v24, %v579_v32  ;;  %v634_v39 = vadd.f32 %v1020_v24, %v595_v33  ;;  %v582_v40 = vmul.f32 %v854_v36, %v1015_v22 }
  0xf6   : > { %v598_v41 = vmul.f32 %v870_v37, %v1015_v22  ;;  %v652_v42 = vmax.f32 %v620_v34, 0.0  ;;  %v668_v43 = vmax.f32 %v636_v35, 0.0  ;;  %v472_v44 = vpop.f32.mrf.mxu0  ;;  %v536_v45 = vpop.f32.mrf.mxu1 }
  0xf7   : > { %v650_v46 = vmax.f32 %v618_v38, 0.0  ;;  %v666_v47 = vmax.f32 %v634_v39, 0.0  ;;  %v621_v48 = vadd.f32 %v1020_v24, %v582_v40  ;;  %v580_v50 = vmul.f32 %v1015_v22, %v472_v44 }
  0xf8   : > { %v637_v49 = vadd.f32 %v1020_v24, %v598_v41  ;;  %684 = vst [vmem:[%s1032_s13 + $0x50] sm:$0xff] %v652_v42  ;;  %700 = vst [vmem:[%s1032_s13 + $0xd0] sm:$0xff] %v668_v43  ;;  %v596_v51 = vmul.f32 %v1015_v22, %v536_v45  ;;  %v857_v52 = vpop.f32.mrf.mxu0  ;;  %v873_v53 = vpop.f32.mrf.mxu1 }
  0xf9   : > { %682 = vst [vmem:[%s1032_s13 + $0x40] sm:$0xff] %v650_v46  ;;  %698 = vst [vmem:[%s1032_s13 + $0xc0] sm:$0xff] %v666_v47  ;;  %v653_v54 = vmax.f32 %v621_v48, 0.0  ;;  %v585_v56 = vmul.f32 %v857_v52, %v1015_v22  ;;  %v601_v57 = vmul.f32 %v873_v53, %v1015_v22  ;;  %v619_v58 = vadd.f32 %v1020_v24, %v580_v50 }
  0xfa   : > { %v669_v55 = vmax.f32 %v637_v49, 0.0  ;;  %v635_v59 = vadd.f32 %v1020_v24, %v596_v51  ;;  %v485_v60 = vpop.f32.mrf.mxu0  ;;  %v549_v61 = vpop.f32.mrf.mxu1 }
  0xfb   : > { %685 = vst [vmem:[%s1032_s13 + $0x58] sm:$0xff] %v653_v54  ;;  %v624_v62 = vadd.f32 %v1020_v24, %v585_v56  ;;  %v640_v63 = vadd.f32 %v1020_v24, %v601_v57  ;;  %v583_v0 = vmul.f32 %v1015_v22, %v485_v60  ;;  %v599_v1 = vmul.f32 %v1015_v22, %v549_v61 }
  0xfc   : > { %701 = vst [vmem:[%s1032_s13 + $0xd8] sm:$0xff] %v669_v55  ;;  %v651_v2 = vmax.f32 %v619_v58, 0.0  ;;  %v667_v3 = vmax.f32 %v635_v59, 0.0  ;;  %v858_v4 = vpop.f32.mrf.mxu0  ;;  %v874_v5 = vpop.f32.mrf.mxu1 }
  0xfd   : > { %v656_v6 = vmax.f32 %v624_v62, 0.0  ;;  %v672_v7 = vmax.f32 %v640_v63, 0.0  ;;  %v622_v8 = vadd.f32 %v1020_v24, %v583_v0  ;;  %v638_v9 = vadd.f32 %v1020_v24, %v599_v1 }
  0xfe   : > { %683 = vst [vmem:[%s1032_s13 + $0x48] sm:$0xff] %v651_v2  ;;  %699 = vst [vmem:[%s1032_s13 + $0xc8] sm:$0xff] %v667_v3  ;;  %v586_v10 = vmul.f32 %v858_v4, %v1015_v22  ;;  %v602_v11 = vmul.f32 %v874_v5, %v1015_v22  ;;  %v488_v12 = vpop.f32.mrf.mxu0  ;;  %v552_v13 = vpop.f32.mrf.mxu1 }
  0xff   : > { %688 = vst [vmem:[%s1032_s13 + $0x70] sm:$0xff] %v656_v6  ;;  %704 = vst [vmem:[%s1032_s13 + $0xf0] sm:$0xff] %v672_v7  ;;  %v654_v14 = vmax.f32 %v622_v8, 0.0  ;;  %v670_v15 = vmax.f32 %v638_v9, 0.0  ;;  %v584_v16 = vmul.f32 %v1015_v22, %v488_v12  ;;  %v600_v17 = vmul.f32 %v1015_v22, %v552_v13 }
 0x100   : > { %v625_v18 = vadd.f32 %v1020_v24, %v586_v10  ;;  %v641_v19 = vadd.f32 %v1020_v24, %v602_v11 }
 0x101   : > { %686 = vst [vmem:[%s1032_s13 + $0x60] sm:$0xff] %v654_v14  ;;  %702 = vst [vmem:[%s1032_s13 + $0xe0] sm:$0xff] %v670_v15  ;;  %v623_v20 = vadd.f32 %v1020_v24, %v584_v16  ;;  %v639_v21 = vadd.f32 %v1020_v24, %v600_v17 }
 0x102   : > { %v657_v23 = vmax.f32 %v625_v18, 0.0  ;;  %v673_v25 = vmax.f32 %v641_v19, 0.0 }
 0x103   : > { %v655_v26 = vmax.f32 %v623_v20, 0.0  ;;  %v671_v27 = vmax.f32 %v639_v21, 0.0 }
 0x104   : > { %689 = vst [vmem:[%s1032_s13 + $0x78] sm:$0xff] %v657_v23  ;;  %705 = vst [vmem:[%s1032_s13 + $0xf8] sm:$0xff] %v673_v25 }
 0x105   : > { %687 = vst [vmem:[%s1032_s13 + $0x68] sm:$0xff] %v655_v26  ;;  %703 = vst [vmem:[%s1032_s13 + $0xe8] sm:$0xff] %v671_v27 }
 0x106 PF: > { %s14_s15 = sadd.s32 1, %s922_s15  }
 0x107   : > { %p11_p4 = scmp.ge.s32.totalorder %s14_s15, 4  }
 0x109   :  { %13 = sbr.rel (!%p11_p4) target bundleno = 1 (0x1), region = 66 }

// kernel: encoder_forward.12
= control target key start
LH: loop header
LB: loop body
LE: loop exit
PB: predicated region body
PF: predicated region fallthrough
CT: control target
= control target key end

     0   :  { %vm135_vm0 = vcmask 1043456   ;;  %vm110_vm1 = vcmask 588800   ;;  %s567_s1 = inlined_call_operand.vmem [shape: bf16[72,128], index: 1, kind: input, shape index: {}]   ;;  %s568_s0 = inlined_call_operand.vmem [shape: bf16[128,72], index: 0, kind: input, shape index: {}]   ;;  %s569_s2 = inlined_call_operand.vmem [shape: f32[1,128], index: 2, kind: input, shape index: {}]   ;;  %s570_s3 = inlined_call_operand.vmem [shape: f32[1,128], index: 3, kind: input, shape index: {}]   ;;  %s571_s4 = inlined_call_operand.vmem [shape: f32[128,128], index: 4, kind: output, shape index: {}]  }
   0x1   :  { %v392_v0 = vld [vmem:[%s567_s1 + $0x20] ss:$0 sps:$4 sm:$0xff]   ;;  %v393_v1 = vld [vmem:[%s567_s1 + $0x18] sm:$0xff]   ;;  %v394_v3 = vld [vmem:[%s567_s1 + $0x10] sm:$0xff]  }
   0x2   :  { %390 = vmatprep.subr.msk.bf16.mxu0 %vm135_vm0, %v392_v0  ;;  %391 = vmatprep.subr.msk.bf16.mxu1 %vm135_vm0, %v392_v0  ;;  %v137_v2 = vsel %vm135_vm0, %v392_v0, 0  ;;  %v397_v4 = vld [vmem:[%s568_s0] sm:$0xff]   ;;  %v395_v6 = vld [vmem:[%s567_s1 + $0x8] sm:$0xff]   ;;  %v401_v10 = vld [vmem:[%s568_s0 + $0x10] sm:$0xff]  }
   0x3   :  { %355 = vmatpush3.bf16.msra.mxu0 %v137_v2  ;;  %385 = vmatpush3.bf16.msra.mxu1 %v137_v2  ;;  %v398_v5 = vld [vmem:[%s568_s0 + $0x20] sm:$0xff]   ;;  %v399_v8 = vld [vmem:[%s568_s0 + $0x8] sm:$0xff]   ;;  %v402_v11 = vld [vmem:[%s568_s0 + $0x30] sm:$0xff]  }
   0x4   :  { %356 = vmatprep.subr.bf16.mxu0 %v393_v1  ;;  %381 = vmatprep.subr.bf16.mxu1 %v393_v1  ;;  %v396_v7 = vld [vmem:[%s567_s1] sm:$0xff]   ;;  %v400_v9 = vld [vmem:[%s568_s0 + $0x28] sm:$0xff]   ;;  %v403_v12 = vld [vmem:[%s568_s0 + $0x18] sm:$0xff]  }
   0x5   :  { %364 = vmatprep.mubr.msk.bf16.mxu0 %vm110_vm1, %v397_v4  ;;  %372 = vmatprep.mubr.msk.bf16.mxu1 %vm110_vm1, %v398_v5  ;;  %v404_v13 = vld [vmem:[%s568_s0 + $0x38] sm:$0xff]   ;;  %v480_v14 = vld [vmem:[%s569_s2] ss:$0 sm:$0xff] }
   0x6   :  { %v485_v16 = vld [vmem:[%s570_s3] ss:$0 sm:$0xff] }
   0x7   :  { %357 = vmatpush3.bf16.msra.mxu0 %v393_v1  ;;  %386 = vmatpush3.bf16.msra.mxu1 %v393_v1 }
   0x8   :  { %358 = vmatprep.subr.bf16.mxu0 %v394_v3  ;;  %382 = vmatprep.subr.bf16.mxu1 %v394_v3 }
   0xb   :  { %359 = vmatpush3.bf16.msra.mxu0 %v394_v3  ;;  %387 = vmatpush3.bf16.msra.mxu1 %v394_v3 }
   0xc   :  { %360 = vmatprep.subr.bf16.mxu0 %v395_v6  ;;  %383 = vmatprep.subr.bf16.mxu1 %v395_v6 }
   0xf   :  { %361 = vmatpush3.bf16.msra.mxu0 %v395_v6  ;;  %388 = vmatpush3.bf16.msra.mxu1 %v395_v6 }
  0x10   :  { %362 = vmatprep.subr.bf16.mxu0 %v396_v7  ;;  %384 = vmatprep.subr.bf16.mxu1 %v396_v7 }
  0x13   :  { %363 = vmatpush3.bf16.msra.mxu0 %v396_v7  ;;  %389 = vmatpush3.bf16.msra.mxu1 %v396_v7 }
  0x16   :  { %365 = vmatmul.mubr.msk.bf16.vlgmr.msra.gmra.mxu0 %vm110_vm1, %v399_v8  ;;  %373 = vmatmul.mubr.msk.bf16.vlgmr.msra.gmra.mxu1 %vm110_vm1, %v400_v9 }
  0x17   :  { %368 = vmatprep.mubr.msk.bf16.mxu0 %vm110_vm1, %v401_v10  ;;  %376 = vmatprep.mubr.msk.bf16.mxu1 %vm110_vm1, %v402_v11 }
  0x1e   :  { %369 = vmatmul.mubr.msk.bf16.gmra.mxu0 %vm110_vm1, %v403_v12  ;;  %377 = vmatmul.mubr.msk.bf16.gmra.mxu1 %vm110_vm1, %v404_v13 }
  0xd6   :  { %v366_v15 = vpop.f32.mrf.mxu0  ;;  %v374_v17 = vpop.f32.mrf.mxu1 }
  0xd7   :  { %v245_v18 = vmul.f32 %v366_v15, %v480_v14  ;;  %v253_v19 = vmul.f32 %v374_v17, %v480_v14 }
  0xd8   :  { %v173_v20 = vpop.f32.mrf.mxu0  ;;  %v205_v21 = vpop.f32.mrf.mxu1 }
  0xd9   :  { %v268_v22 = vadd.f32 %v485_v16, %v245_v18  ;;  %v276_v23 = vadd.f32 %v485_v16, %v253_v19  ;;  %v243_v24 = vmul.f32 %v480_v14, %v173_v20  ;;  %v251_v25 = vmul.f32 %v480_v14, %v205_v21 }
  0xda   :  { %v367_v26 = vpop.f32.mrf.mxu0  ;;  %v375_v27 = vpop.f32.mrf.mxu1 }
  0xdb   :  { %v284_v28 = vmax.f32 %v268_v22, 0.0  ;;  %v292_v29 = vmax.f32 %v276_v23, 0.0  ;;  %v266_v30 = vadd.f32 %v485_v16, %v243_v24  ;;  %v274_v31 = vadd.f32 %v485_v16, %v251_v25 }
  0xdc   :  { %v246_v32 = vmul.f32 %v367_v26, %v480_v14  ;;  %v254_v33 = vmul.f32 %v375_v27, %v480_v14  ;;  %v176_v34 = vpop.f32.mrf.mxu0  ;;  %v208_v35 = vpop.f32.mrf.mxu1 }
  0xdd   :  { %300 = vst [vmem:[%s571_s4 + $0x10] sm:$0xff] %v284_v28  ;;  %308 = vst [vmem:[%s571_s4 + $0x50] sm:$0xff] %v292_v29  ;;  %v282_v36 = vmax.f32 %v266_v30, 0.0  ;;  %v290_v37 = vmax.f32 %v274_v31, 0.0  ;;  %v244_v38 = vmul.f32 %v480_v14, %v176_v34  ;;  %v252_v39 = vmul.f32 %v480_v14, %v208_v35 }
  0xde   :  { %v269_v40 = vadd.f32 %v485_v16, %v246_v32  ;;  %v277_v41 = vadd.f32 %v485_v16, %v254_v33  ;;  %v370_v42 = vpop.f32.mrf.mxu0  ;;  %v378_v43 = vpop.f32.mrf.mxu1 }
  0xdf   :  { %298 = vst [vmem:[%s571_s4] sm:$0xff] %v282_v36  ;;  %306 = vst [vmem:[%s571_s4 + $0x40] sm:$0xff] %v290_v37  ;;  %v267_v44 = vadd.f32 %v485_v16, %v244_v38  ;;  %v275_v45 = vadd.f32 %v485_v16, %v252_v39  ;;  %v249_v46 = vmul.f32 %v370_v42, %v480_v14 }
  0xe0   :  { %v257_v47 = vmul.f32 %v378_v43, %v480_v14  ;;  %v285_v48 = vmax.f32 %v269_v40, 0.0  ;;  %v293_v49 = vmax.f32 %v277_v41, 0.0  ;;  %v189_v50 = vpop.f32.mrf.mxu0  ;;  %v221_v51 = vpop.f32.mrf.mxu1 }
  0xe1   :  { %v283_v52 = vmax.f32 %v267_v44, 0.0  ;;  %v291_v53 = vmax.f32 %v275_v45, 0.0  ;;  %v272_v54 = vadd.f32 %v485_v16, %v249_v46  ;;  %v247_v56 = vmul.f32 %v480_v14, %v189_v50 }
  0xe2   :  { %v280_v55 = vadd.f32 %v485_v16, %v257_v47  ;;  %301 = vst [vmem:[%s571_s4 + $0x18] sm:$0xff] %v285_v48  ;;  %309 = vst [vmem:[%s571_s4 + $0x58] sm:$0xff] %v293_v49  ;;  %v255_v57 = vmul.f32 %v480_v14, %v221_v51  ;;  %v371_v58 = vpop.f32.mrf.mxu0  ;;  %v379_v59 = vpop.f32.mrf.mxu1 }
  0xe3   :  { %299 = vst [vmem:[%s571_s4 + $0x8] sm:$0xff] %v283_v52  ;;  %307 = vst [vmem:[%s571_s4 + $0x48] sm:$0xff] %v291_v53  ;;  %v288_v60 = vmax.f32 %v272_v54, 0.0  ;;  %v250_v62 = vmul.f32 %v371_v58, %v480_v14  ;;  %v258_v63 = vmul.f32 %v379_v59, %v480_v14  ;;  %v270_v0 = vadd.f32 %v485_v16, %v247_v56 }
  0xe4   :  { %v296_v61 = vmax.f32 %v280_v55, 0.0  ;;  %v278_v1 = vadd.f32 %v485_v16, %v255_v57  ;;  %v192_v2 = vpop.f32.mrf.mxu0  ;;  %v224_v3 = vpop.f32.mrf.mxu1 }
  0xe5   :  { %304 = vst [vmem:[%s571_s4 + $0x30] sm:$0xff] %v288_v60  ;;  %v273_v4 = vadd.f32 %v485_v16, %v250_v62  ;;  %v281_v5 = vadd.f32 %v485_v16, %v258_v63  ;;  %v248_v6 = vmul.f32 %v480_v14, %v192_v2  ;;  %v256_v7 = vmul.f32 %v480_v14, %v224_v3 }
  0xe6   :  { %312 = vst [vmem:[%s571_s4 + $0x70] sm:$0xff] %v296_v61  ;;  %v286_v8 = vmax.f32 %v270_v0, 0.0  ;;  %v294_v9 = vmax.f32 %v278_v1, 0.0 }
  0xe7   :  { %v289_v10 = vmax.f32 %v273_v4, 0.0  ;;  %v297_v11 = vmax.f32 %v281_v5, 0.0  ;;  %v271_v12 = vadd.f32 %v485_v16, %v248_v6  ;;  %v279_v13 = vadd.f32 %v485_v16, %v256_v7 }
  0xe8   :  { %302 = vst [vmem:[%s571_s4 + $0x20] sm:$0xff] %v286_v8  ;;  %310 = vst [vmem:[%s571_s4 + $0x60] sm:$0xff] %v294_v9 }
  0xe9   :  { %305 = vst [vmem:[%s571_s4 + $0x38] sm:$0xff] %v289_v10  ;;  %313 = vst [vmem:[%s571_s4 + $0x78] sm:$0xff] %v297_v11  ;;  %v287_v14 = vmax.f32 %v271_v12, 0.0  ;;  %v295_v15 = vmax.f32 %v279_v13, 0.0 }
  0xeb   :  { %303 = vst [vmem:[%s571_s4 + $0x28] sm:$0xff] %v287_v14  ;;  %311 = vst [vmem:[%s571_s4 + $0x68] sm:$0xff] %v295_v15 }

// kernel: encoder_forward.13
= control target key start
LH: loop header
LB: loop body
LE: loop exit
PB: predicated region body
PF: predicated region fallthrough
CT: control target
= control target key end

     0   :  { %v469_v0 = vmov 0   ;;  %vm178_vm0 = vcmask 130048   ;;  %s668_s1 = inlined_call_operand.vmem [shape: bf16[144,128], index: 1, kind: input, shape index: {}]   ;;  %s669_s0 = inlined_call_operand.vmem [shape: bf16[128,144], index: 0, kind: input, shape index: {}]   ;;  %s670_s2 = inlined_call_operand.vmem [shape: f32[1,128], index: 2, kind: input, shape index: {}]   ;;  %s671_s3 = inlined_call_operand.vmem [shape: f32[1,128], index: 3, kind: input, shape index: {}]   ;;  %s672_s4 = inlined_call_operand.vmem [shape: f32[128,128], index: 4, kind: output, shape index: {}]  }
   0x1   :  { %203 = vmatprep.subr.bf16.mxu0 %v469_v0  ;;  %417 = vmatprep.subr.bf16.mxu1 %v469_v0  ;;  %v436_v1 = vld [vmem:[%s668_s1 + $0x38] sm:$0xff]   ;;  %v437_v2 = vld [vmem:[%s668_s1 + $0x30] sm:$0xff]   ;;  %v438_v3 = vld [vmem:[%s668_s1 + $0x28] sm:$0xff]  }
   0x2   :  { %204 = vmatpush1.bf16.msra.mxu0 %v436_v1  ;;  %426 = vmatpush1.bf16.msra.mxu1 %v436_v1  ;;  %v439_v4 = vld [vmem:[%s668_s1 + $0x20] sm:$0xff]   ;;  %v440_v7 = vld [vmem:[%s668_s1 + $0x18] sm:$0xff]   ;;  %v441_v8 = vld [vmem:[%s668_s1 + $0x10] sm:$0xff]  }
   0x3   :  { %205 = vmatprep.subr.bf16.mxu0 %v469_v0  ;;  %418 = vmatprep.subr.bf16.mxu1 %v469_v0  ;;  %v447_v5 = vld [vmem:[%s669_s0 + $0x4] ss:$8 sps:$4 sm:$0xff]   ;;  %v445_v12 = vld [vmem:[%s669_s0] ss:$8 sps:$4 sm:$0xff]   ;;  %v451_v14 = vld [vmem:[%s669_s0 + $0x14] ss:$8 sps:$4 sm:$0xff]  }
   0x4   :  { %v450_v6 = vld [vmem:[%s669_s0 + $0x44] ss:$8 sps:$4 sm:$0xff]   ;;  %407 = vmatprep.mubr.msk.bf16.mxu0 %vm178_vm0, %v447_v5  ;;  %v448_v13 = vld [vmem:[%s669_s0 + $0x40] ss:$8 sps:$4 sm:$0xff]   ;;  %v453_v15 = vld [vmem:[%s669_s0 + $0x54] ss:$8 sps:$4 sm:$0xff]  }
   0x5   :  { %411 = vmatprep.mubr.msk.bf16.mxu1 %vm178_vm0, %v450_v6  ;;  %v442_v9 = vld [vmem:[%s668_s1 + $0x8] sm:$0xff]   ;;  %v443_v10 = vld [vmem:[%s668_s1] sm:$0xff]   ;;  %v455_v16 = vld [vmem:[%s669_s0 + $0x10] ss:$8 sps:$4 sm:$0xff]  }
   0x6   :  { %206 = vmatpush1.bf16.msra.mxu0 %v437_v2  ;;  %427 = vmatpush1.bf16.msra.mxu1 %v437_v2  ;;  %v444_v11 = vld [vmem:[%s668_s1 + $0x40] sm:$0xff]   ;;  %v456_v17 = vld [vmem:[%s669_s0 + $0x50] ss:$8 sps:$4 sm:$0xff]   ;;  %v463_v22 = vld [vmem:[%s669_s0 + $0x34] ss:$8 sps:$4 sm:$0xff]  }
   0x7   :  { %207 = vmatprep.subr.bf16.mxu0 %v469_v0  ;;  %419 = vmatprep.subr.bf16.mxu1 %v469_v0  ;;  %v457_v18 = vld [vmem:[%s669_s0 + $0x24] ss:$8 sps:$4 sm:$0xff]   ;;  %v461_v20 = vld [vmem:[%s669_s0 + $0x20] ss:$8 sps:$4 sm:$0xff]   ;;  %v465_v23 = vld [vmem:[%s669_s0 + $0x74] ss:$8 sps:$4 sm:$0xff]  }
   0x8   :  { %v459_v19 = vld [vmem:[%s669_s0 + $0x64] ss:$8 sps:$4 sm:$0xff]   ;;  %v462_v21 = vld [vmem:[%s669_s0 + $0x60] ss:$8 sps:$4 sm:$0xff]   ;;  %v467_v24 = vld [vmem:[%s669_s0 + $0x30] ss:$8 sps:$4 sm:$0xff]  }
   0x9   :  { %v468_v25 = vld [vmem:[%s669_s0 + $0x70] ss:$8 sps:$4 sm:$0xff]   ;;  %v581_v26 = vld [vmem:[%s670_s2] ss:$0 sm:$0xff] }
   0xa   :  { %208 = vmatpush1.bf16.msra.mxu0 %v438_v3  ;;  %428 = vmatpush1.bf16.msra.mxu1 %v438_v3  ;;  %v586_v28 = vld [vmem:[%s671_s3] ss:$0 sm:$0xff] }
   0xb   :  { %209 = vmatprep.subr.bf16.mxu0 %v469_v0  ;;  %420 = vmatprep.subr.bf16.mxu1 %v469_v0 }
   0xe   :  { %210 = vmatpush1.bf16.msra.mxu0 %v439_v4  ;;  %429 = vmatpush1.bf16.msra.mxu1 %v439_v4 }
   0xf   :  { %211 = vmatprep.subr.bf16.mxu0 %v469_v0  ;;  %421 = vmatprep.subr.bf16.mxu1 %v469_v0 }
  0x12   :  { %212 = vmatpush1.bf16.msra.mxu0 %v440_v7  ;;  %430 = vmatpush1.bf16.msra.mxu1 %v440_v7 }
  0x13   :  { %213 = vmatprep.subr.bf16.mxu0 %v469_v0  ;;  %422 = vmatprep.subr.bf16.mxu1 %v469_v0 }
  0x16   :  { %214 = vmatpush1.bf16.msra.mxu0 %v441_v8  ;;  %431 = vmatpush1.bf16.msra.mxu1 %v441_v8 }
  0x17   :  { %215 = vmatprep.subr.bf16.mxu0 %v469_v0  ;;  %423 = vmatprep.subr.bf16.mxu1 %v469_v0 }
  0x1a   :  { %216 = vmatpush1.bf16.msra.mxu0 %v442_v9  ;;  %432 = vmatpush1.bf16.msra.mxu1 %v442_v9 }
  0x1b   :  { %217 = vmatprep.subr.bf16.mxu0 %v469_v0  ;;  %424 = vmatprep.subr.bf16.mxu1 %v469_v0 }
  0x1e   :  { %218 = vmatpush1.bf16.msra.mxu0 %v443_v10  ;;  %433 = vmatpush1.bf16.msra.mxu1 %v443_v10 }
  0x1f   :  { %233 = vmatprep.subr.bf16.mxu0 %v469_v0  ;;  %425 = vmatprep.subr.bf16.mxu1 %v469_v0 }
  0x22   :  { %234 = vmatpush2.bf16.msra.mxu0 %v444_v11  ;;  %434 = vmatpush2.bf16.msra.mxu1 %v444_v11 }
  0x25   :  { %236 = vmatmul.mubr.bf16.vlgmr.msra.gmra.mxu0 %v445_v12  ;;  %268 = vmatmul.mubr.bf16.vlgmr.msra.gmra.mxu1 %v448_v13 }
  0x26   :  { %408 = vmatprep.mubr.msk.bf16.mxu0 %vm178_vm0, %v451_v14  ;;  %412 = vmatprep.mubr.msk.bf16.mxu1 %vm178_vm0, %v453_v15 }
  0x2d   :  { %244 = vmatmul.mubr.bf16.gmra.mxu0 %v455_v16  ;;  %276 = vmatmul.mubr.bf16.gmra.mxu1 %v456_v17 }
  0x2e   :  { %409 = vmatprep.mubr.msk.bf16.mxu0 %vm178_vm0, %v457_v18  ;;  %413 = vmatprep.mubr.msk.bf16.mxu1 %vm178_vm0, %v459_v19 }
  0x35   :  { %252 = vmatmul.mubr.bf16.gmra.mxu0 %v461_v20  ;;  %284 = vmatmul.mubr.bf16.gmra.mxu1 %v462_v21 }
  0x36   :  { %410 = vmatprep.mubr.msk.bf16.mxu0 %vm178_vm0, %v463_v22  ;;  %414 = vmatprep.mubr.msk.bf16.mxu1 %vm178_vm0, %v465_v23 }
  0x3d   :  { %260 = vmatmul.mubr.bf16.gmra.mxu0 %v467_v24  ;;  %292 = vmatmul.mubr.bf16.gmra.mxu1 %v468_v25 }
  0xe5   :  { %v237_v27 = vpop.f32.mrf.mxu0  ;;  %v269_v29 = vpop.f32.mrf.mxu1 }
  0xe6   :  { %v307_v30 = vmul.f32 %v581_v26, %v237_v27  ;;  %v315_v31 = vmul.f32 %v581_v26, %v269_v29 }
  0xe7   :  { %v239_v32 = vpop.f32.mrf.mxu0  ;;  %v271_v33 = vpop.f32.mrf.mxu1 }
  0xe8   :  { %v330_v34 = vadd.f32 %v586_v28, %v307_v30  ;;  %v338_v35 = vadd.f32 %v586_v28, %v315_v31 }
  0xe9   :  { %v240_v36 = vpop.f32.mrf.mxu0  ;;  %v272_v37 = vpop.f32.mrf.mxu1 }
  0xea   :  { %v346_v38 = vmax.f32 %v330_v34, 0.0  ;;  %v354_v39 = vmax.f32 %v338_v35, 0.0  ;;  %v308_v40 = vmul.f32 %v581_v26, %v240_v36  ;;  %v316_v41 = vmul.f32 %v581_v26, %v272_v37 }
  0xeb   :  { %v242_v42 = vpop.f32.mrf.mxu0  ;;  %v274_v43 = vpop.f32.mrf.mxu1 }
  0xec   :  { %362 = vst [vmem:[%s672_s4] sm:$0xff] %v346_v38  ;;  %370 = vst [vmem:[%s672_s4 + $0x40] sm:$0xff] %v354_v39  ;;  %v331_v44 = vadd.f32 %v586_v28, %v308_v40  ;;  %v339_v45 = vadd.f32 %v586_v28, %v316_v41 }
  0xed   :  { %v245_v46 = vpop.f32.mrf.mxu0  ;;  %v277_v47 = vpop.f32.mrf.mxu1 }
  0xee   :  { %v347_v48 = vmax.f32 %v331_v44, 0.0  ;;  %v355_v49 = vmax.f32 %v339_v45, 0.0  ;;  %v309_v50 = vmul.f32 %v581_v26, %v245_v46  ;;  %v317_v51 = vmul.f32 %v581_v26, %v277_v47 }
  0xef   :  { %v247_v52 = vpop.f32.mrf.mxu0  ;;  %v279_v53 = vpop.f32.mrf.mxu1 }
  0xf0   :  { %363 = vst [vmem:[%s672_s4 + $0x8] sm:$0xff] %v347_v48  ;;  %371 = vst [vmem:[%s672_s4 + $0x48] sm:$0xff] %v355_v49  ;;  %v332_v54 = vadd.f32 %v586_v28, %v309_v50  ;;  %v340_v55 = vadd.f32 %v586_v28, %v317_v51 }
  0xf1   :  { %v248_v56 = vpop.f32.mrf.mxu0  ;;  %v280_v57 = vpop.f32.mrf.mxu1 }
  0xf2   :  { %v348_v58 = vmax.f32 %v332_v54, 0.0  ;;  %v356_v59 = vmax.f32 %v340_v55, 0.0  ;;  %v310_v60 = vmul.f32 %v581_v26, %v248_v56  ;;  %v318_v61 = vmul.f32 %v581_v26, %v280_v57 }
  0xf3   :  { %v250_v62 = vpop.f32.mrf.mxu0  ;;  %v282_v63 = vpop.f32.mrf.mxu1 }
  0xf4   :  { %364 = vst [vmem:[%s672_s4 + $0x10] sm:$0xff] %v348_v58  ;;  %372 = vst [vmem:[%s672_s4 + $0x50] sm:$0xff] %v356_v59  ;;  %v333_v0 = vadd.f32 %v586_v28, %v310_v60  ;;  %v341_v1 = vadd.f32 %v586_v28, %v318_v61 }
  0xf5   :  { %v253_v2 = vpop.f32.mrf.mxu0  ;;  %v285_v3 = vpop.f32.mrf.mxu1 }
  0xf6   :  { %v349_v4 = vmax.f32 %v333_v0, 0.0  ;;  %v357_v5 = vmax.f32 %v341_v1, 0.0  ;;  %v311_v6 = vmul.f32 %v581_v26, %v253_v2  ;;  %v319_v7 = vmul.f32 %v581_v26, %v285_v3 }
  0xf7   :  { %v255_v8 = vpop.f32.mrf.mxu0  ;;  %v287_v9 = vpop.f32.mrf.mxu1 }
  0xf8   :  { %365 = vst [vmem:[%s672_s4 + $0x18] sm:$0xff] %v349_v4  ;;  %373 = vst [vmem:[%s672_s4 + $0x58] sm:$0xff] %v357_v5  ;;  %v334_v10 = vadd.f32 %v586_v28, %v311_v6  ;;  %v342_v11 = vadd.f32 %v586_v28, %v319_v7 }
  0xf9   :  { %v256_v12 = vpop.f32.mrf.mxu0  ;;  %v288_v13 = vpop.f32.mrf.mxu1 }
  0xfa   :  { %v350_v14 = vmax.f32 %v334_v10, 0.0  ;;  %v358_v15 = vmax.f32 %v342_v11, 0.0  ;;  %v312_v16 = vmul.f32 %v581_v26, %v256_v12  ;;  %v320_v17 = vmul.f32 %v581_v26, %v288_v13 }
  0xfb   :  { %v258_v18 = vpop.f32.mrf.mxu0  ;;  %v290_v19 = vpop.f32.mrf.mxu1 }
  0xfc   :  { %366 = vst [vmem:[%s672_s4 + $0x20] sm:$0xff] %v350_v14  ;;  %374 = vst [vmem:[%s672_s4 + $0x60] sm:$0xff] %v358_v15  ;;  %v335_v20 = vadd.f32 %v586_v28, %v312_v16  ;;  %v343_v21 = vadd.f32 %v586_v28, %v320_v17 }
  0xfd   :  { %v261_v22 = vpop.f32.mrf.mxu0  ;;  %v293_v23 = vpop.f32.mrf.mxu1 }
  0xfe   :  { %v351_v24 = vmax.f32 %v335_v20, 0.0  ;;  %v359_v25 = vmax.f32 %v343_v21, 0.0  ;;  %v313_v27 = vmul.f32 %v581_v26, %v261_v22  ;;  %v321_v29 = vmul.f32 %v581_v26, %v293_v23 }
  0xff   :  { %v263_v30 = vpop.f32.mrf.mxu0  ;;  %v295_v31 = vpop.f32.mrf.mxu1 }
 0x100   :  { %367 = vst [vmem:[%s672_s4 + $0x28] sm:$0xff] %v351_v24  ;;  %375 = vst [vmem:[%s672_s4 + $0x68] sm:$0xff] %v359_v25  ;;  %v336_v32 = vadd.f32 %v586_v28, %v313_v27  ;;  %v344_v33 = vadd.f32 %v586_v28, %v321_v29 }
 0x101   :  { %v264_v34 = vpop.f32.mrf.mxu0  ;;  %v296_v35 = vpop.f32.mrf.mxu1 }
 0x102   :  { %v352_v36 = vmax.f32 %v336_v32, 0.0  ;;  %v360_v37 = vmax.f32 %v344_v33, 0.0  ;;  %v314_v38 = vmul.f32 %v581_v26, %v264_v34  ;;  %v322_v39 = vmul.f32 %v581_v26, %v296_v35 }
 0x103   :  { %v266_v40 = vpop.f32.mrf.mxu0  ;;  %v298_v41 = vpop.f32.mrf.mxu1 }
 0x104   :  { %368 = vst [vmem:[%s672_s4 + $0x30] sm:$0xff] %v352_v36  ;;  %376 = vst [vmem:[%s672_s4 + $0x70] sm:$0xff] %v360_v37  ;;  %v337_v42 = vadd.f32 %v586_v28, %v314_v38  ;;  %v345_v43 = vadd.f32 %v586_v28, %v322_v39 }
 0x106   :  { %v353_v44 = vmax.f32 %v337_v42, 0.0  ;;  %v361_v45 = vmax.f32 %v345_v43, 0.0 }
 0x108   :  { %369 = vst [vmem:[%s672_s4 + $0x38] sm:$0xff] %v353_v44  ;;  %377 = vst [vmem:[%s672_s4 + $0x78] sm:$0xff] %v361_v45 }

// kernel: encoder_forward.14
= control target key start
LH: loop header
LB: loop body
LE: loop exit
PB: predicated region body
PF: predicated region fallthrough
CT: control target
= control target key end

     0   :  { %v253_v0 = vmov 0   ;;  %vm112_vm0 = vcmask 130048   ;;  %s336_s1 = inlined_call_operand.vmem [shape: bf16[144,128], index: 1, kind: input, shape index: {}]   ;;  %s337_s0 = inlined_call_operand.vmem [shape: bf16[32,144], index: 0, kind: input, shape index: {}]   ;;  %s338_s2 = inlined_call_operand.vmem [shape: f32[1,128], index: 2, kind: input, shape index: {}]   ;;  %s339_s3 = inlined_call_operand.vmem [shape: f32[1,128], index: 3, kind: input, shape index: {}]   ;;  %s340_s4 = inlined_call_operand.vmem [shape: f32[32,128], index: 4, kind: output, shape index: {}]  }
   0x1   :  { %119 = vmatprep.subr.bf16.mxu0 %v253_v0  ;;  %219 = vmatprep.subr.bf16.mxu1 %v253_v0  ;;  %v238_v1 = vld [vmem:[%s336_s1 + $0x38] sm:$0xff]   ;;  %v239_v2 = vld [vmem:[%s336_s1 + $0x30] sm:$0xff]   ;;  %v240_v3 = vld [vmem:[%s336_s1 + $0x28] sm:$0xff]  }
   0x2   :  { %120 = vmatpush1.bf16.msra.mxu0 %v238_v1  ;;  %228 = vmatpush1.bf16.msra.mxu1 %v238_v1  ;;  %v241_v4 = vld [vmem:[%s336_s1 + $0x20] sm:$0xff]   ;;  %v252_v6 = vld [vmem:[%s337_s0 + $0x14] ss:$8 sps:$4 sm:$0xff]   ;;  %v244_v9 = vld [vmem:[%s336_s1 + $0x8] sm:$0xff]  }
   0x3   :  { %121 = vmatprep.subr.bf16.mxu0 %v253_v0  ;;  %220 = vmatprep.subr.bf16.mxu1 %v253_v0  ;;  %v249_v5 = vld [vmem:[%s337_s0 + $0x4] ss:$8 sps:$4 sm:$0xff]   ;;  %v242_v7 = vld [vmem:[%s336_s1 + $0x18] sm:$0xff]   ;;  %v243_v8 = vld [vmem:[%s336_s1 + $0x10] sm:$0xff]  }
   0x4   :  { %215 = vmatprep.mubr.msk.bf16.mxu0 %vm112_vm0, %v249_v5  ;;  %216 = vmatprep.mubr.msk.bf16.mxu1 %vm112_vm0, %v252_v6  ;;  %v245_v10 = vld [vmem:[%s336_s1] sm:$0xff]   ;;  %v250_v13 = vld [vmem:[%s337_s0 + $0x10] ss:$8 sps:$4 sm:$0xff]  }
   0x5   :  { %v246_v11 = vld [vmem:[%s336_s1 + $0x40] sm:$0xff]  }
   0x6   :  { %122 = vmatpush1.bf16.msra.mxu0 %v239_v2  ;;  %229 = vmatpush1.bf16.msra.mxu1 %v239_v2  ;;  %v247_v12 = vld [vmem:[%s337_s0] ss:$8 sps:$4 sm:$0xff]  }
   0x7   :  { %123 = vmatprep.subr.bf16.mxu0 %v253_v0  ;;  %221 = vmatprep.subr.bf16.mxu1 %v253_v0  ;;  %v217_v14 = vld [vmem:[%s338_s2] ss:$0 sm:$0xff] }
   0x8   :  { %v218_v16 = vld [vmem:[%s339_s3] ss:$0 sm:$0xff] }
   0xa   :  { %124 = vmatpush1.bf16.msra.mxu0 %v240_v3  ;;  %230 = vmatpush1.bf16.msra.mxu1 %v240_v3 }
   0xb   :  { %125 = vmatprep.subr.bf16.mxu0 %v253_v0  ;;  %222 = vmatprep.subr.bf16.mxu1 %v253_v0 }
   0xe   :  { %126 = vmatpush1.bf16.msra.mxu0 %v241_v4  ;;  %231 = vmatpush1.bf16.msra.mxu1 %v241_v4 }
   0xf   :  { %127 = vmatprep.subr.bf16.mxu0 %v253_v0  ;;  %223 = vmatprep.subr.bf16.mxu1 %v253_v0 }
  0x12   :  { %128 = vmatpush1.bf16.msra.mxu0 %v242_v7  ;;  %232 = vmatpush1.bf16.msra.mxu1 %v242_v7 }
  0x13   :  { %129 = vmatprep.subr.bf16.mxu0 %v253_v0  ;;  %224 = vmatprep.subr.bf16.mxu1 %v253_v0 }
  0x16   :  { %130 = vmatpush1.bf16.msra.mxu0 %v243_v8  ;;  %233 = vmatpush1.bf16.msra.mxu1 %v243_v8 }
  0x17   :  { %131 = vmatprep.subr.bf16.mxu0 %v253_v0  ;;  %225 = vmatprep.subr.bf16.mxu1 %v253_v0 }
  0x1a   :  { %132 = vmatpush1.bf16.msra.mxu0 %v244_v9  ;;  %234 = vmatpush1.bf16.msra.mxu1 %v244_v9 }
  0x1b   :  { %133 = vmatprep.subr.bf16.mxu0 %v253_v0  ;;  %226 = vmatprep.subr.bf16.mxu1 %v253_v0 }
  0x1e   :  { %134 = vmatpush1.bf16.msra.mxu0 %v245_v10  ;;  %235 = vmatpush1.bf16.msra.mxu1 %v245_v10 }
  0x1f   :  { %149 = vmatprep.subr.bf16.mxu0 %v253_v0  ;;  %227 = vmatprep.subr.bf16.mxu1 %v253_v0 }
  0x22   :  { %150 = vmatpush2.bf16.msra.mxu0 %v246_v11  ;;  %236 = vmatpush2.bf16.msra.mxu1 %v246_v11 }
  0x25   :  { %152 = vmatmul.mubr.bf16.vlgmr.msra.gmra.mxu0 %v247_v12  ;;  %160 = vmatmul.mubr.bf16.vlgmr.msra.gmra.mxu1 %v250_v13 }
  0xe5   :  { %v153_v15 = vpop.f32.mrf.mxu0  ;;  %v161_v17 = vpop.f32.mrf.mxu1 }
  0xe6   :  { %v175_v18 = vmul.f32 %v217_v14, %v153_v15  ;;  %v177_v19 = vmul.f32 %v217_v14, %v161_v17 }
  0xe7   :  { %v155_v20 = vpop.f32.mrf.mxu0  ;;  %v163_v21 = vpop.f32.mrf.mxu1 }
  0xe8   :  { %v186_v22 = vadd.f32 %v218_v16, %v175_v18  ;;  %v188_v23 = vadd.f32 %v218_v16, %v177_v19 }
  0xe9   :  { %v156_v24 = vpop.f32.mrf.mxu0  ;;  %v164_v25 = vpop.f32.mrf.mxu1 }
  0xea   :  { %v190_v26 = vmax.f32 %v186_v22, 0.0  ;;  %v192_v27 = vmax.f32 %v188_v23, 0.0  ;;  %v176_v28 = vmul.f32 %v217_v14, %v156_v24  ;;  %v178_v29 = vmul.f32 %v217_v14, %v164_v25 }
  0xeb   :  { %v158_v30 = vpop.f32.mrf.mxu0  ;;  %v166_v31 = vpop.f32.mrf.mxu1 }
  0xec   :  { %194 = vst [vmem:[%s340_s4] sm:$0xff] %v190_v26  ;;  %196 = vst [vmem:[%s340_s4 + $0x10] sm:$0xff] %v192_v27  ;;  %v187_v32 = vadd.f32 %v218_v16, %v176_v28  ;;  %v189_v33 = vadd.f32 %v218_v16, %v178_v29 }
  0xee   :  { %v191_v34 = vmax.f32 %v187_v32, 0.0  ;;  %v193_v35 = vmax.f32 %v189_v33, 0.0 }
  0xf0   :  { %195 = vst [vmem:[%s340_s4 + $0x8] sm:$0xff] %v191_v34  ;;  %197 = vst [vmem:[%s340_s4 + $0x18] sm:$0xff] %v193_v35 }

// kernel: encoder_forward.15
= control target key start
LH: loop header
LB: loop body
LE: loop exit
PB: predicated region body
PF: predicated region fallthrough
CT: control target
= control target key end

     0   :  { %vm200_vm0 = vcmask 261120   ;;  %s548_s1 = inlined_call_operand.vmem [shape: bf16[288,128], index: 1, kind: input, shape index: {}]   ;;  %s549_s0 = inlined_call_operand.vmem [shape: bf16[32,288], index: 0, kind: input, shape index: {}]   ;;  %s550_s2 = inlined_call_operand.vmem [shape: f32[1,128], index: 2, kind: input, shape index: {}]   ;;  %s551_s3 = inlined_call_operand.vmem [shape: f32[1,128], index: 3, kind: input, shape index: {}]   ;;  %s552_s4 = inlined_call_operand.vmem [shape: f32[32,128], index: 4, kind: output, shape index: {}]  }
   0x1   :  { %v407_v0 = vld [vmem:[%s548_s1 + $0x78] sm:$0xff]   ;;  %v409_v2 = vld [vmem:[%s548_s1 + $0x70] sm:$0xff]   ;;  %v411_v4 = vld [vmem:[%s548_s1 + $0x68] sm:$0xff]  }
   0x2   :  { %v408_v1 = vld [vmem:[%s548_s1 + $0x38] sm:$0xff]   ;;  %367 = vmatprep.subr.bf16.mxu0 %v407_v0  ;;  %v410_v3 = vld [vmem:[%s548_s1 + $0x30] sm:$0xff]   ;;  %v412_v5 = vld [vmem:[%s548_s1 + $0x28] sm:$0xff]  }
   0x3   :  { %368 = vmatpush3.bf16.msra.mxu0 %v408_v1  ;;  %v413_v6 = vld [vmem:[%s548_s1 + $0x60] sm:$0xff]   ;;  %v415_v8 = vld [vmem:[%s548_s1 + $0x58] sm:$0xff]   ;;  %v421_v9 = vld [vmem:[%s548_s1 + $0x88] sm:$0xff]  }
   0x4   :  { %369 = vmatprep.subr.bf16.mxu0 %v409_v2  ;;  %v414_v7 = vld [vmem:[%s548_s1 + $0x20] sm:$0xff]   ;;  %v416_v10 = vld [vmem:[%s548_s1 + $0x18] sm:$0xff]   ;;  %v417_v11 = vld [vmem:[%s548_s1 + $0x50] sm:$0xff]   ;;  %399 = vmatprep.subr.bf16.mxu1 %v421_v9 }
   0x5   :  { %v418_v12 = vld [vmem:[%s548_s1 + $0x10] sm:$0xff]   ;;  %400 = vmatpush3.bf16.msra.mxu1 %v421_v9  ;;  %v424_v13 = vld [vmem:[%s548_s1 + $0x80] sm:$0xff]   ;;  %v419_v14 = vld [vmem:[%s548_s1 + $0x48] sm:$0xff]  }
   0x6   :  { %401 = vmatprep.subr.bf16.mxu1 %v424_v13  ;;  %v427_v15 = vld [vmem:[%s549_s0 + $0x4] ss:$12 sps:$4 sm:$0xff]   ;;  %v428_v16 = vld [vmem:[%s549_s0 + $0x8] ss:$12 sps:$4 sm:$0xff]   ;;  %v429_v17 = vld [vmem:[%s549_s0 + $0x20] ss:$12 sps:$4 sm:$0xff]  }
   0x7   :  { %370 = vmatpush3.bf16.msra.mxu0 %v410_v3  ;;  %239 = vmatprep.mubr.bf16.mxu0 %v427_v15  ;;  %v420_v18 = vld [vmem:[%s548_s1 + $0x8] sm:$0xff]   ;;  %v422_v19 = vld [vmem:[%s548_s1 + $0x40] sm:$0xff]  }
   0x8   :  { %371 = vmatprep.subr.bf16.mxu0 %v411_v4  ;;  %403 = vmatprep.mubr.msk.bf16.mxu1 %vm200_vm0, %v428_v16  ;;  %v423_v20 = vld [vmem:[%s548_s1] sm:$0xff]   ;;  %v430_v22 = vld [vmem:[%s549_s0 + $0x1c] ss:$12 sps:$4 sm:$0xff]  }
   0x9   :  { %402 = vmatpush3.bf16.msra.mxu1 %v424_v13  ;;  %v425_v21 = vld [vmem:[%s549_s0] ss:$12 sps:$4 sm:$0xff]   ;;  %v432_v23 = vld [vmem:[%s549_s0 + $0x18] ss:$12 sps:$4 sm:$0xff]  }
   0xa   :  { %v365_v31 = vld [vmem:[%s550_s2] ss:$0 sm:$0xff] }
   0xb   :  { %372 = vmatpush3.bf16.msra.mxu0 %v412_v5  ;;  %v366_v33 = vld [vmem:[%s551_s3] ss:$0 sm:$0xff] }
   0xc   :  { %373 = vmatprep.subr.bf16.mxu0 %v413_v6  ;;  %404 = vmatmul.mubr.msk.bf16.vlgmr.msra.gmra.mxu1 %vm200_vm0, %v429_v17 }
   0xf   :  { %374 = vmatpush3.bf16.msra.mxu0 %v414_v7 }
  0x10   :  { %375 = vmatprep.subr.bf16.mxu0 %v415_v8 }
  0x13   :  { %376 = vmatpush3.bf16.msra.mxu0 %v416_v10 }
  0x14   :  { %377 = vmatprep.subr.bf16.mxu0 %v417_v11 }
  0x17   :  { %378 = vmatpush3.bf16.msra.mxu0 %v418_v12 }
  0x18   :  { %379 = vmatprep.subr.bf16.mxu0 %v419_v14 }
  0x1b   :  { %380 = vmatpush3.bf16.msra.mxu0 %v420_v18 }
  0x1c   :  { %381 = vmatprep.subr.bf16.mxu0 %v422_v19 }
  0x1f   :  { %382 = vmatpush3.bf16.msra.mxu0 %v423_v20 }
  0x22   :  { %240 = vmatmul.mubr.bf16.vlgmr.msra.gmra.mxu0 %v425_v21 }
  0x23   :  { %247 = vmatprep.mubr.bf16.mxu0 %v430_v22 }
  0x2a   :  { %248 = vmatmul.mubr.bf16.gmra.mxu0 %v432_v23 }
  0xcc   :  { %v405_v24 = vpop.f32.mrf.mxu1 }
  0xce   :  { %v290_v25 = vpop.f32.mrf.mxu1 }
  0xd0   :  { %v406_v28 = vpop.f32.mrf.mxu1 }
  0xd2   :  { %v293_v35 = vpop.f32.mrf.mxu1 }
  0xe2   :  { %v383_v26 = vpop.f32.mrf.mxu0 }
  0xe4   :  { %v384_v27 = vpop.f32.mrf.mxu0 }
  0xe5   :  { %v385_v29 = vadd.f32 %v384_v27, %v383_v26 }
  0xe6   :  { %v386_v30 = vpop.f32.mrf.mxu0 }
  0xe7   :  { %v291_v32 = vadd.f32 %v385_v29, %v290_v25 }
  0xe8   :  { %v387_v34 = vpop.f32.mrf.mxu0 }
  0xe9   :  { %v312_v36 = vmul.f32 %v365_v31, %v291_v32  ;;  %v388_v37 = vadd.f32 %v387_v34, %v386_v30 }
  0xea   :  { %v389_v38 = vpop.f32.mrf.mxu0 }
  0xeb   :  { %v323_v39 = vadd.f32 %v366_v33, %v312_v36  ;;  %v294_v40 = vadd.f32 %v388_v37, %v293_v35 }
  0xec   :  { %v390_v41 = vpop.f32.mrf.mxu0 }
  0xed   :  { %v327_v42 = vmax.f32 %v323_v39, 0.0  ;;  %v313_v43 = vmul.f32 %v365_v31, %v294_v40  ;;  %v391_v44 = vadd.f32 %v390_v41, %v389_v38 }
  0xee   :  { %v392_v45 = vpop.f32.mrf.mxu0 }
  0xef   :  { %331 = vst [vmem:[%s552_s4] sm:$0xff] %v327_v42  ;;  %v324_v46 = vadd.f32 %v366_v33, %v313_v43  ;;  %v299_v47 = vadd.f32 %v405_v24, %v391_v44 }
  0xf0   :  { %v393_v48 = vpop.f32.mrf.mxu0 }
  0xf1   :  { %v328_v49 = vmax.f32 %v324_v46, 0.0  ;;  %v314_v50 = vmul.f32 %v365_v31, %v299_v47  ;;  %v394_v51 = vadd.f32 %v393_v48, %v392_v45 }
  0xf3   :  { %332 = vst [vmem:[%s552_s4 + $0x8] sm:$0xff] %v328_v49  ;;  %v325_v52 = vadd.f32 %v366_v33, %v314_v50  ;;  %v302_v53 = vadd.f32 %v406_v28, %v394_v51 }
  0xf5   :  { %v329_v54 = vmax.f32 %v325_v52, 0.0  ;;  %v315_v55 = vmul.f32 %v365_v31, %v302_v53 }
  0xf7   :  { %333 = vst [vmem:[%s552_s4 + $0x10] sm:$0xff] %v329_v54  ;;  %v326_v56 = vadd.f32 %v366_v33, %v315_v55 }
  0xf9   :  { %v330_v57 = vmax.f32 %v326_v56, 0.0 }
  0xfb   :  { %334 = vst [vmem:[%s552_s4 + $0x18] sm:$0xff] %v330_v57 }

// kernel: encoder_forward.16
= control target key start
LH: loop header
LB: loop body
LE: loop exit
PB: predicated region body
PF: predicated region fallthrough
CT: control target
= control target key end

     0   :  { %v360_v1 = vmov 0.0   ;;  %vm361_vm0 = vmmov 0   ;;  %vm174_vm1 = vcmask 261120   ;;  %s456_s1 = inlined_call_operand.vmem [shape: bf16[288,128], index: 1, kind: input, shape index: {}]   ;;  %s457_s0 = inlined_call_operand.vmem [shape: bf16[8,288], index: 0, kind: input, shape index: {}]   ;;  %s458_s2 = inlined_call_operand.vmem [shape: f32[1,128], index: 2, kind: input, shape index: {}]   ;;  %s459_s3 = inlined_call_operand.vmem [shape: f32[1,128], index: 3, kind: input, shape index: {}]   ;;  %s460_s4 = inlined_call_operand.vmem [shape: f32[8,128], index: 4, kind: output, shape index: {}]  }
   0x1   :  { %v339_v0 = vld [vmem:[%s456_s1 + $0x78] sm:$0xff]   ;;  %329 = vmatprep.subr.bf16.mxu1 %v360_v1  ;;  %333 = vmatprep.mubr.msk.bf16.mxu1 %vm361_vm0, %v360_v1  ;;  %v341_v3 = vld [vmem:[%s456_s1 + $0x70] sm:$0xff]   ;;  %v343_v5 = vld [vmem:[%s456_s1 + $0x68] sm:$0xff]  }
   0x2   :  { %v340_v2 = vld [vmem:[%s456_s1 + $0x38] sm:$0xff]   ;;  %304 = vmatprep.subr.bf16.mxu0 %v339_v0  ;;  %v342_v4 = vld [vmem:[%s456_s1 + $0x30] sm:$0xff]   ;;  %v344_v6 = vld [vmem:[%s456_s1 + $0x28] sm:$0xff]  }
   0x3   :  { %305 = vmatpush3.bf16.msra.mxu0 %v340_v2  ;;  %v345_v7 = vld [vmem:[%s456_s1 + $0x60] sm:$0xff]   ;;  %v347_v9 = vld [vmem:[%s456_s1 + $0x58] sm:$0xff]   ;;  %v351_v10 = vld [vmem:[%s456_s1 + $0x88] sm:$0xff]  }
   0x4   :  { %306 = vmatprep.subr.bf16.mxu0 %v341_v3  ;;  %v346_v8 = vld [vmem:[%s456_s1 + $0x20] sm:$0xff]   ;;  %v348_v11 = vld [vmem:[%s456_s1 + $0x18] sm:$0xff]   ;;  %330 = vmatpush3.bf16.msra.mxu1 %v351_v10  ;;  %v349_v13 = vld [vmem:[%s456_s1 + $0x50] sm:$0xff]  }
   0x5   :  { %331 = vmatprep.subr.bf16.mxu1 %v360_v1  ;;  %v354_v12 = vld [vmem:[%s456_s1 + $0x80] sm:$0xff]   ;;  %v357_v14 = vld [vmem:[%s457_s0 + $0x8] ss:$0 sps:$4 sm:$0xff]   ;;  %v350_v16 = vld [vmem:[%s456_s1 + $0x10] sm:$0xff]  }
   0x6   :  { %v18_v15 = vld [vmem:[%s457_s0] sm:$0xff]  ;;  %v352_v18 = vld [vmem:[%s456_s1 + $0x48] sm:$0xff]  }
   0x7   :  { %307 = vmatpush3.bf16.msra.mxu0 %v342_v4  ;;  %v281_v17 = vcombine.high %v18_v15, %v18_v15  ;;  %v353_v19 = vld [vmem:[%s456_s1 + $0x8] sm:$0xff]   ;;  %v355_v20 = vld [vmem:[%s456_s1 + $0x40] sm:$0xff]   ;;  %v280_v22 = vcombine.low %v18_v15, %v18_v15 }
   0x8   :  { %308 = vmatprep.subr.bf16.mxu0 %v343_v5  ;;  %332 = vmatpush3.bf16.msra.mxu1 %v354_v12  ;;  %v356_v21 = vld [vmem:[%s456_s1] sm:$0xff]  }
   0x9   :  { %210 = vmatprep.mubr.bf16.mxu0 %v281_v17  ;;  %v302_v30 = vld [vmem:[%s458_s2] ss:$0 sm:$0xff] }
   0xa   :  { %v303_v33 = vld [vmem:[%s459_s3] ss:$0 sm:$0xff] }
   0xb   :  { %309 = vmatpush3.bf16.msra.mxu0 %v344_v6  ;;  %334 = vmatmul.mubr.msk.bf16.vlgmr.msra.gmra.mxu1 %vm174_vm1, %v357_v14 }
   0xc   :  { %310 = vmatprep.subr.bf16.mxu0 %v345_v7 }
   0xf   :  { %311 = vmatpush3.bf16.msra.mxu0 %v346_v8 }
  0x10   :  { %312 = vmatprep.subr.bf16.mxu0 %v347_v9 }
  0x13   :  { %313 = vmatpush3.bf16.msra.mxu0 %v348_v11 }
  0x14   :  { %314 = vmatprep.subr.bf16.mxu0 %v349_v13 }
  0x17   :  { %315 = vmatpush3.bf16.msra.mxu0 %v350_v16 }
  0x18   :  { %316 = vmatprep.subr.bf16.mxu0 %v352_v18 }
  0x1b   :  { %317 = vmatpush3.bf16.msra.mxu0 %v353_v19 }
  0x1c   :  { %318 = vmatprep.subr.bf16.mxu0 %v355_v20 }
  0x1f   :  { %319 = vmatpush3.bf16.msra.mxu0 %v356_v21 }
  0x22   :  { %211 = vmatmul.mubr.bf16.vlgmr.msra.gmra.mxu0 %v280_v22 }
  0xcb   :  { %v252_v23 = vpop.f32.mrf.mxu1 }
  0xcd   :  { %v335_v24 = vpop.f32.mrf.mxu1 }
  0xcf   :  { %v255_v25 = vpop.f32.mrf.mxu1 }
  0xd1   :  { %v336_v26 = vpop.f32.mrf.mxu1 }
  0xe2   :  { %v320_v27 = vpop.f32.mrf.mxu0 }
  0xe4   :  { %v321_v28 = vpop.f32.mrf.mxu0 }
  0xe5   :  { %v322_v29 = vadd.f32 %v321_v28, %v320_v27 }
  0xe6   :  { %v323_v31 = vpop.f32.mrf.mxu0 }
  0xe7   :  { %v253_v32 = vadd.f32 %v322_v29, %v252_v23 }
  0xe8   :  { %v324_v34 = vpop.f32.mrf.mxu0 }
  0xe9   :  { %v265_v35 = vmul.f32 %v302_v30, %v253_v32 }
  0xeb   :  { %v273_v36 = vadd.f32 %v303_v33, %v265_v35 }
  0xed   :  { %v274_v37 = vmax.f32 %v273_v36, 0.0 }
  0xef   :  { %275 = vst [vmem:[%s460_s4] sm:$0xff] %v274_v37 }

// kernel: encoder_forward.17
= control target key start
LH: loop header
LB: loop body
LE: loop exit
PB: predicated region body
PF: predicated region fallthrough
CT: control target
= control target key end

     0   :  { %v620_v36 = vmov 0.0   ;;  %vm621_vm0 = vmmov 0   ;;  %vm326_vm1 = vcmask 523264   ;;  %s773_s1 = inlined_call_operand.vmem [shape: bf16[576,128], index: 1, kind: input, shape index: {}]   ;;  %s774_s0 = inlined_call_operand.vmem [shape: bf16[8,576], index: 0, kind: input, shape index: {}]   ;;  %s775_s2 = inlined_call_operand.vmem [shape: f32[1,128], index: 2, kind: input, shape index: {}]   ;;  %s776_s3 = inlined_call_operand.vmem [shape: f32[1,128], index: 3, kind: input, shape index: {}]   ;;  %s777_s4 = inlined_call_operand.vmem [shape: f32[8,128], index: 4, kind: output, shape index: {}]  }
   0x1   :  { %v579_v0 = vld [vmem:[%s773_s1 + $0x78] sm:$0xff]   ;;  %v583_v4 = vld [vmem:[%s773_s1 + $0x70] sm:$0xff]   ;;  %v587_v8 = vld [vmem:[%s773_s1 + $0x68] sm:$0xff]  }
   0x2   :  { %v580_v1 = vld [vmem:[%s773_s1 + $0xf8] sm:$0xff]   ;;  %516 = vmatprep.subr.bf16.mxu0 %v579_v0  ;;  %v584_v5 = vld [vmem:[%s773_s1 + $0xf0] sm:$0xff]   ;;  %v588_v9 = vld [vmem:[%s773_s1 + $0xe8] sm:$0xff]  }
   0x3   :  { %v581_v2 = vld [vmem:[%s773_s1 + $0x38] sm:$0xff]   ;;  %538 = vmatprep.subr.bf16.mxu1 %v580_v1  ;;  %v585_v6 = vld [vmem:[%s773_s1 + $0x30] sm:$0xff]   ;;  %v589_v10 = vld [vmem:[%s773_s1 + $0x28] sm:$0xff]  }
   0x4   :  { %v582_v3 = vld [vmem:[%s773_s1 + $0xb8] sm:$0xff]   ;;  %517 = vmatpush3.bf16.msra.mxu0 %v581_v2  ;;  %v586_v7 = vld [vmem:[%s773_s1 + $0xb0] sm:$0xff]   ;;  %v590_v11 = vld [vmem:[%s773_s1 + $0xa8] sm:$0xff]  }
   0x5   :  { %539 = vmatpush3.bf16.msra.mxu1 %v582_v3  ;;  %518 = vmatprep.subr.bf16.mxu0 %v583_v4  ;;  %v591_v12 = vld [vmem:[%s773_s1 + $0x60] sm:$0xff]   ;;  %v595_v16 = vld [vmem:[%s773_s1 + $0x58] sm:$0xff]   ;;  %v599_v20 = vld [vmem:[%s773_s1 + $0x50] sm:$0xff]  }
   0x6   :  { %540 = vmatprep.subr.bf16.mxu1 %v584_v5  ;;  %v592_v13 = vld [vmem:[%s773_s1 + $0xe0] sm:$0xff]   ;;  %v596_v17 = vld [vmem:[%s773_s1 + $0xd8] sm:$0xff]   ;;  %v600_v21 = vld [vmem:[%s773_s1 + $0xd0] sm:$0xff]  }
   0x7   :  { %v593_v14 = vld [vmem:[%s773_s1 + $0x20] sm:$0xff]   ;;  %v597_v18 = vld [vmem:[%s773_s1 + $0x18] sm:$0xff]   ;;  %v601_v22 = vld [vmem:[%s773_s1 + $0x10] sm:$0xff]  }
   0x8   :  { %519 = vmatpush3.bf16.msra.mxu0 %v585_v6  ;;  %v594_v15 = vld [vmem:[%s773_s1 + $0xa0] sm:$0xff]   ;;  %v598_v19 = vld [vmem:[%s773_s1 + $0x98] sm:$0xff]   ;;  %v602_v23 = vld [vmem:[%s773_s1 + $0x90] sm:$0xff]  }
   0x9   :  { %541 = vmatpush3.bf16.msra.mxu1 %v586_v7  ;;  %520 = vmatprep.subr.bf16.mxu0 %v587_v8  ;;  %v603_v24 = vld [vmem:[%s773_s1 + $0x48] sm:$0xff]   ;;  %v607_v28 = vld [vmem:[%s773_s1 + $0x40] sm:$0xff]   ;;  %v616_v39 = vld [vmem:[%s773_s1 + $0x118] sm:$0xff]  }
   0xa   :  { %542 = vmatprep.subr.bf16.mxu1 %v588_v9  ;;  %v604_v25 = vld [vmem:[%s773_s1 + $0xc8] sm:$0xff]   ;;  %v608_v29 = vld [vmem:[%s773_s1 + $0xc0] sm:$0xff]   ;;  %v617_v40 = vld [vmem:[%s773_s1 + $0x110] sm:$0xff]  }
   0xb   :  { %v605_v26 = vld [vmem:[%s773_s1 + $0x8] sm:$0xff]   ;;  %v609_v30 = vld [vmem:[%s773_s1] sm:$0xff]   ;;  %v613_v43 = vld [vmem:[%s774_s0 + $0x10] ss:$0 sps:$4 sm:$0xff]  }
   0xc   :  { %521 = vmatpush3.bf16.msra.mxu0 %v589_v10  ;;  %v606_v27 = vld [vmem:[%s773_s1 + $0x88] sm:$0xff]   ;;  %v610_v31 = vld [vmem:[%s773_s1 + $0x80] sm:$0xff]  }
   0xd   :  { %543 = vmatpush3.bf16.msra.mxu1 %v590_v11  ;;  %522 = vmatprep.subr.bf16.mxu0 %v591_v12  ;;  %v18_v32 = vld [vmem:[%s774_s0] sm:$0xff]  ;;  %v19_v35 = vld [vmem:[%s774_s0 + $0x8] sm:$0xff] }
   0xe   :  { %544 = vmatprep.subr.bf16.mxu1 %v592_v13  ;;  %v472_v33 = vcombine.low %v18_v32, %v18_v32  ;;  %v473_v34 = vcombine.high %v18_v32, %v18_v32  ;;  %v474_v37 = vcombine.low %v19_v35, %v19_v35  ;;  %v475_v38 = vcombine.high %v19_v35, %v19_v35  ;;  %v618_v41 = vld [vmem:[%s773_s1 + $0x108] sm:$0xff]   ;;  %v619_v42 = vld [vmem:[%s773_s1 + $0x100] sm:$0xff]  }
   0xf   :  { %v514_v56 = vld [vmem:[%s775_s2] ss:$0 sm:$0xff] }
  0x10   :  { %523 = vmatpush3.bf16.msra.mxu0 %v593_v14  ;;  %362 = vmatprep.mubr.bf16.mxu0 %v473_v34  ;;  %v515_v58 = vld [vmem:[%s776_s3] ss:$0 sm:$0xff] }
  0x11   :  { %545 = vmatpush3.bf16.msra.mxu1 %v594_v15  ;;  %524 = vmatprep.subr.bf16.mxu0 %v595_v16 }
  0x12   :  { %546 = vmatprep.subr.bf16.mxu1 %v596_v17  ;;  %402 = vmatprep.mubr.bf16.mxu1 %v475_v38 }
  0x14   :  { %525 = vmatpush3.bf16.msra.mxu0 %v597_v18 }
  0x15   :  { %547 = vmatpush3.bf16.msra.mxu1 %v598_v19  ;;  %526 = vmatprep.subr.bf16.mxu0 %v599_v20 }
  0x16   :  { %548 = vmatprep.subr.bf16.mxu1 %v600_v21 }
  0x18   :  { %527 = vmatpush3.bf16.msra.mxu0 %v601_v22 }
  0x19   :  { %549 = vmatpush3.bf16.msra.mxu1 %v602_v23  ;;  %528 = vmatprep.subr.bf16.mxu0 %v603_v24 }
  0x1a   :  { %550 = vmatprep.subr.bf16.mxu1 %v604_v25 }
  0x1c   :  { %529 = vmatpush3.bf16.msra.mxu0 %v605_v26 }
  0x1d   :  { %551 = vmatpush3.bf16.msra.mxu1 %v606_v27  ;;  %530 = vmatprep.subr.bf16.mxu0 %v607_v28 }
  0x1e   :  { %552 = vmatprep.subr.bf16.mxu1 %v608_v29 }
  0x20   :  { %531 = vmatpush3.bf16.msra.mxu0 %v609_v30 }
  0x21   :  { %553 = vmatpush3.bf16.msra.mxu1 %v610_v31  ;;  %565 = vmatprep.subr.bf16.mxu0 %v620_v36 }
  0x23   :  { %363 = vmatmul.mubr.bf16.vlgmr.msra.gmra.mxu0 %v472_v33 }
  0x24   :  { %403 = vmatmul.mubr.bf16.vlgmr.msra.gmra.mxu1 %v474_v37  ;;  %566 = vmatpush3.bf16.msra.mxu0 %v616_v39 }
  0x25   :  { %567 = vmatprep.subr.bf16.mxu0 %v620_v36  ;;  %573 = vmatprep.mubr.msk.bf16.mxu0 %vm621_vm0, %v620_v36 }
  0x28   :  { %568 = vmatpush3.bf16.msra.mxu0 %v617_v40 }
  0x29   :  { %569 = vmatprep.subr.bf16.mxu0 %v620_v36 }
  0x2c   :  { %570 = vmatpush3.bf16.msra.mxu0 %v618_v41 }
  0x2d   :  { %571 = vmatprep.subr.bf16.mxu0 %v620_v36 }
  0x30   :  { %572 = vmatpush3.bf16.msra.mxu0 %v619_v42 }
  0x33   :  { %574 = vmatmul.mubr.msk.bf16.vlgmr.msra.gmra.mxu0 %vm326_vm1, %v613_v43 }
  0xe3   :  { %v532_v44 = vpop.f32.mrf.mxu0 }
  0xe4   :  { %v554_v45 = vpop.f32.mrf.mxu1 }
  0xe5   :  { %v533_v46 = vpop.f32.mrf.mxu0 }
  0xe6   :  { %v555_v47 = vpop.f32.mrf.mxu1  ;;  %v534_v52 = vadd.f32 %v533_v46, %v532_v44 }
  0xe7   :  { %v535_v48 = vpop.f32.mrf.mxu0  ;;  %v556_v53 = vadd.f32 %v555_v47, %v554_v45 }
  0xe8   :  { %v557_v49 = vpop.f32.mrf.mxu1 }
  0xe9   :  { %v536_v50 = vpop.f32.mrf.mxu0  ;;  %v405_v54 = vadd.f32 %v556_v53, %v534_v52 }
  0xea   :  { %v558_v51 = vpop.f32.mrf.mxu1 }
  0xf3   :  { %v444_v55 = vpop.f32.mrf.mxu0 }
  0xf4   :  { %v445_v57 = vadd.f32 %v444_v55, %v405_v54 }
  0xf5   :  { %v575_v59 = vpop.f32.mrf.mxu0 }
  0xf6   :  { %v457_v60 = vmul.f32 %v514_v56, %v445_v57 }
  0xf7   :  { %v447_v61 = vpop.f32.mrf.mxu0 }
  0xf8   :  { %v465_v62 = vadd.f32 %v515_v58, %v457_v60 }
  0xf9   :  { %v576_v63 = vpop.f32.mrf.mxu0 }
  0xfa   :  { %v466_v0 = vmax.f32 %v465_v62, 0.0 }
  0xfc   :  { %467 = vst [vmem:[%s777_s4] sm:$0xff] %v466_v0 }

</bundles_post_ra>
